<compile_context>
chip_gen: v7x
topology: tpu7x:2x2x1
jax: 0.10.0
libtpu: 0.0.40
codegen_flags: <defaults>
</compile_context>

<pallas_src>
import functools

import jax
import jax.numpy as jnp
from jax import lax
from jax.experimental import pallas as pl
from jax.experimental.pallas import tpu as pltpu  # noqa: F401  (kept for TPU-specific params)

NEG_SLOPE = 0.2   # PyG GATConv default negative_slope
LN_EPS = 1e-5     # torch.nn.LayerNorm default eps
MASK_FILL = -1e30


# ----------------------- fused whole-network GATv2 kernel ------------------------

def _gatv2_fused_kernel(x_ref, mask_ref, bd_ref, *refs, layer_meta):
    """Entire GATv2 forward (all layers, all heads) in one kernel.

    x_ref    : [N, F_in0]                 input node features
    mask_ref : [N, N] bf16                additive mask: 0 where edge j->i (incl. self loops),
                                          -1e30 otherwise
    bd_ref   : [H*N, H*F_out_hidden]      block-diagonal 0/1 head mask (shared by hidden layers)
    refs     : per hidden block (waug, usrc, bias, gamma, beta), then final (waug, usrc, bias),
               followed by the single output ref [N, OUT_PAD]
    layer_meta: tuple of (heads, f_out, apply_ln_elu) per layer (static).
    """
    o_ref = refs[-1]
    prefs = refs[:-1]

    mask_bias = mask_ref[...].astype(jnp.float32)     # hoisted once; all score math stays f32
    bd = bd_ref[...]
    x = x_ref[...]

    idx = 0
    for (heads, f_out, apply_ln_elu) in layer_meta:
        hf = heads * f_out
        waug = prefs[idx][...].astype(jnp.bfloat16)   # [F_in, hf + H]  = [W_all | W_h @ att_dst_h]
        usrc = prefs[idx + 1][...].astype(jnp.bfloat16)  # [F_in, H]     = W_h @ att_src_h
        bias = prefs[idx + 2][...]                    # [1, hf]
        if apply_ln_elu:
            gamma = prefs[idx + 3][...]
            beta = prefs[idx + 4][...]
            idx += 5
        else:
            gamma = beta = None
            idx += 3

        xb = x.astype(jnp.bfloat16)

        # One MXU pass -> projected features for all heads + per-head destination logits.
        proj = jnp.dot(xb, waug, preferred_element_type=jnp.float32)   # [N, hf + H]
        xl = proj[:, :hf]                                              # [N, hf]
        a_dst = proj[:, hf:]                                           # [N, H]

        # Source logits directly in [H, N] layout (broadcast over the source/lane axis).
        a_src = lax.dot_general(usrc, xb,
                                dimension_numbers=(((0,), (1,)), ((), ())),
                                preferred_element_type=jnp.float32)    # [H, N]

        p_blocks = []
        for h in range(heads):                                         # static unroll, H small
            s = a_dst[:, h:h + 1] + a_src[h:h + 1, :]                  # [N(dst), N(src)]
            s = jnp.maximum(s, NEG_SLOPE * s)                          # LeakyReLU: mul + max
            s = s + mask_bias                                          # additive mask (no cmp/sel)
            m = jnp.max(s, axis=-1, keepdims=True)                     # finite (self loops present)
            p = jnp.exp(s - m)                                         # masked lanes -> 0
            denom = jnp.sum(p, axis=-1, keepdims=True)                 # > 0 by construction
            # EUP reciprocal; normalization folded into P. For the large-N tiled path,
            # defer this scale until after the accumulation (flash-style) instead.
            p_blocks.append(p * pl.reciprocal(denom, approx=True))

        if heads == 1:
            out = jnp.dot(p_blocks[0].astype(jnp.bfloat16), xl.astype(jnp.bfloat16),
                          preferred_element_type=jnp.float32)          # [N, hf]
        else:
            # Single MXU push for ALL heads: [N, H*N] @ block-diag([H*N, hf]) -> concatenated
            # lane-dense [N, hf] with no per-head 16-lane matmuls and no output concat.
            P = jnp.concatenate(p_blocks, axis=-1)                     # [N, H*N]
            xl_bd = jnp.concatenate([xl] * heads, axis=0) * bd         # [H*N, hf] block-diagonal
            out = jnp.dot(P.astype(jnp.bfloat16), xl_bd.astype(jnp.bfloat16),
                          preferred_element_type=jnp.float32)          # [N, hf]

        y = out + bias
        if apply_ln_elu:
            mu = jnp.mean(y, axis=-1, keepdims=True)
            yc = y - mu
            var = jnp.mean(yc * yc, axis=-1, keepdims=True)
            y = yc * lax.rsqrt(var + LN_EPS) * gamma + beta
            y = jnp.where(y > 0.0, y, jnp.exp(y) - 1.0)                # ELU(alpha=1)
        x = y                                                          # stays in VMEM/vregs

    assert idx == len(prefs)
    o_ref[...] = x                                                     # lane-dense [N, OUT_PAD] store


# --------------------------------- wrapper --------------------------------------

def _block_diag_mask(heads, n, f_out):
    row_head = jnp.repeat(jnp.arange(heads, dtype=jnp.int32), n)[:, None]       # [H*N, 1]
    col_head = jnp.repeat(jnp.arange(heads, dtype=jnp.int32), f_out)[None, :]   # [1, H*F_out]
    return (row_head == col_head).astype(jnp.float32)


def gatv2_forward(params, x, mask_bias):
    """Whole GATv2 forward in ONE pallas_call.

    x: [N, F_in0]; mask_bias: [N, N] bf16 additive mask (0 edge / -1e30 no-edge, self loops set).
    Returns [N, out_channels].
    """
    n, _ = x.shape
    blocks = params["blocks"]
    final = params["final"]

    inputs = [x, mask_bias]
    layer_meta = []

    # Block-diagonal head mask shared by all hidden blocks (they have identical H, F_out).
    h0, _, f0 = blocks[0]["conv"]["w"].shape
    inputs.append(_block_diag_mask(h0, n, f0))

    # ---- hidden GATBlocks: GATConv(concat=True) + LayerNorm + ELU + Dropout(0) ----
    for blk in blocks:
        c = blk["conv"]
        h, f_in, f_out = c["w"].shape
        hf = h * f_out
        # Parameter-only prep (tiny): fold attention vectors into the weights.
        w_all = jnp.transpose(c["w"], (1, 0, 2)).reshape(f_in, hf)     # [F_in, H*F_out]
        u_dst = jnp.einsum('hif,hf->ih', c["w"], c["att_dst"])         # [F_in, H]
        u_src = jnp.einsum('hif,hf->ih', c["w"], c["att_src"])         # [F_in, H]
        waug = jnp.concatenate([w_all, u_dst], axis=1)                 # [F_in, H*F_out + H]
        inputs += [waug, u_src, c["bias"].reshape(1, hf),
                   blk["gamma"].reshape(1, hf), blk["beta"].reshape(1, hf)]
        layer_meta.append((h, f_out, True))

    # ---- final GATConv(heads=1, concat=False): pad output columns to a 128-lane multiple
    #      (zero weight/bias columns) so the only HBM store is a full unmasked vst. ----
    c = final
    _, f_in_f, out_ch = c["w"].shape
    out_pad = ((out_ch + 127) // 128) * 128
    w_all = c["w"][0]                                                  # [F_in, out_ch]
    w_pad = jnp.pad(w_all, ((0, 0), (0, out_pad - out_ch)))            # [F_in, OUT_PAD]
    u_dst = (w_all @ c["att_dst"][0]).reshape(f_in_f, 1)
    u_src = (w_all @ c["att_src"][0]).reshape(f_in_f, 1)
    waug_f = jnp.concatenate([w_pad, u_dst], axis=1)                   # [F_in, OUT_PAD + 1]
    bias_f = jnp.pad(c["bias"], (0, out_pad - out_ch)).reshape(1, out_pad)
    inputs += [waug_f, u_src, bias_f]
    layer_meta.append((1, out_pad, False))

    kernel = functools.partial(_gatv2_fused_kernel, layer_meta=tuple(layer_meta))
    out_padded = pl.pallas_call(
        kernel,
        out_shape=jax.ShapeDtypeStruct((n, out_pad), jnp.float32),
        # No grid: single invocation, every operand is one full VMEM-resident block.
    )(*inputs)
    return out_padded[:, :out_ch]


# ------------------------------ parameter setup -------------------------------

def _glorot(key, shape, fan_in, fan_out):
    lim = (6.0 / (fan_in + fan_out)) ** 0.5
    return jax.random.uniform(key, shape, jnp.float32, -lim, lim)


def init_gatconv(key, f_in, f_out, heads, concat):
    k_w, k_s, k_d = jax.random.split(key, 3)
    return {
        "w": _glorot(k_w, (heads, f_in, f_out), f_in, heads * f_out),
        "att_src": _glorot(k_s, (heads, f_out), f_out, 1),
        "att_dst": _glorot(k_d, (heads, f_out), f_out, 1),
        "bias": jnp.zeros((heads * f_out if concat else f_out,), jnp.float32),
    }


def init_gatv2(key, in_channels, out_channels, n_heads, hidden_channels, num_layers):
    keys = jax.random.split(key, num_layers)
    blocks = []
    f_in = in_channels
    for li in range(num_layers - 1):                 # 1 + (num_layers - 2) GATBlocks
        conv = init_gatconv(keys[li], f_in, hidden_channels, n_heads, concat=True)
        c = hidden_channels * n_heads
        blocks.append({"conv": conv,
                       "gamma": jnp.ones((c,), jnp.float32),
                       "beta": jnp.zeros((c,), jnp.float32)})
        f_in = c
    final = init_gatconv(keys[-1], f_in, out_channels, 1, concat=False)
    return {"blocks": blocks, "final": final}


# --------------------------------- graph prep ------------------------------------

def build_mask_bias(edge_index, num_nodes):
    """Additive attention mask: 0 where edge j -> i (incl. self loops), -1e30 otherwise.

    Invariant: self loops are ALWAYS present (GATConv: remove_self_loops then add_self_loops),
    so every softmax row has a finite max and a strictly positive denominator.
    """
    src, dst = edge_index[0], edge_index[1]
    adj = jnp.zeros((num_nodes, num_nodes), jnp.float32).at[dst, src].set(1.0)
    adj = jnp.maximum(adj, jnp.eye(num_nodes, dtype=jnp.float32))
    return jnp.where(adj > 0, 0.0, MASK_FILL).astype(jnp.bfloat16)


# ----------------------------------- main --------------------------------------

if __name__ == "__main__":
    N = 16                       # nodes
    IN_CH, HIDDEN, HEADS, OUT_CH, NUM_LAYERS = 8, 16, 2, 4, 4

    key = jax.random.PRNGKey(0)
    k_x, k_p, k_e1, k_e2 = jax.random.split(key, 4)

    x = jax.random.normal(k_x, (N, IN_CH), jnp.float32)

    # deterministic edge_index [2, E]: bidirectional ring + a few random edges
    ring_src = jnp.arange(N, dtype=jnp.int32)
    ring_dst = (ring_src + 1) % N
    extra_src = jax.random.randint(k_e1, (8,), 0, N, dtype=jnp.int32)
    extra_dst = jax.random.randint(k_e2, (8,), 0, N, dtype=jnp.int32)
    edge_index = jnp.stack([
        jnp.concatenate([ring_src, ring_dst, extra_src]),
        jnp.concatenate([ring_dst, ring_src, extra_dst]),
    ])

    mask_bias = build_mask_bias(edge_index, N)
    params = init_gatv2(k_p, IN_CH, OUT_CH, HEADS, HIDDEN, NUM_LAYERS)

    out = jax.jit(gatv2_forward)(params, x, mask_bias)
    out = jax.block_until_ready(out)
    assert out.shape == (N, OUT_CH), out.shape
    assert bool(jnp.all(jnp.isfinite(out)))
    print("KERNEL_OK")
</pallas_src>

<mosaic_0001>
module attributes {stable_mosaic.version = 11 : i64} {
  func.func @_gatv2_fused_kernel(%arg0: memref<16x8xf32, #tpu.memory_space<vmem>>, %arg1: memref<16x16xbf16, #tpu.memory_space<vmem>>, %arg2: memref<32x32xf32, #tpu.memory_space<vmem>>, %arg3: memref<8x34xf32, #tpu.memory_space<vmem>>, %arg4: memref<8x2xf32, #tpu.memory_space<vmem>>, %arg5: memref<1x32xf32, #tpu.memory_space<vmem>>, %arg6: memref<1x32xf32, #tpu.memory_space<vmem>>, %arg7: memref<1x32xf32, #tpu.memory_space<vmem>>, %arg8: memref<32x34xf32, #tpu.memory_space<vmem>>, %arg9: memref<32x2xf32, #tpu.memory_space<vmem>>, %arg10: memref<1x32xf32, #tpu.memory_space<vmem>>, %arg11: memref<1x32xf32, #tpu.memory_space<vmem>>, %arg12: memref<1x32xf32, #tpu.memory_space<vmem>>, %arg13: memref<32x34xf32, #tpu.memory_space<vmem>>, %arg14: memref<32x2xf32, #tpu.memory_space<vmem>>, %arg15: memref<1x32xf32, #tpu.memory_space<vmem>>, %arg16: memref<1x32xf32, #tpu.memory_space<vmem>>, %arg17: memref<1x32xf32, #tpu.memory_space<vmem>>, %arg18: memref<32x129xf32, #tpu.memory_space<vmem>>, %arg19: memref<32x1xf32, #tpu.memory_space<vmem>>, %arg20: memref<1x128xf32, #tpu.memory_space<vmem>>, %arg21: memref<16x128xf32, #tpu.memory_space<vmem>>) attributes {dimension_semantics = [], scalar_prefetch = 0 : i64, scratch_operands = 0 : i64, tpu.core_type = #tpu.core_type<tc>} {
    %c0 = arith.constant 0 : index
    %c0_0 = arith.constant 0 : index
    %0 = vector.load %arg1[%c0, %c0_0] : memref<16x16xbf16, #tpu.memory_space<vmem>>, vector<16x16xbf16>
    %1 = arith.extf %0 : vector<16x16xbf16> to vector<16x16xf32>
    %c0_1 = arith.constant 0 : index
    %c0_2 = arith.constant 0 : index
    %2 = vector.load %arg2[%c0_1, %c0_2] : memref<32x32xf32, #tpu.memory_space<vmem>>, vector<32x32xf32>
    %c0_3 = arith.constant 0 : index
    %c0_4 = arith.constant 0 : index
    %3 = vector.load %arg0[%c0_3, %c0_4] : memref<16x8xf32, #tpu.memory_space<vmem>>, vector<16x8xf32>
    %c0_5 = arith.constant 0 : index
    %c0_6 = arith.constant 0 : index
    %4 = vector.load %arg3[%c0_5, %c0_6] : memref<8x34xf32, #tpu.memory_space<vmem>>, vector<8x34xf32>
    %5 = arith.truncf %4 : vector<8x34xf32> to vector<8x34xbf16>
    %c0_7 = arith.constant 0 : index
    %c0_8 = arith.constant 0 : index
    %6 = vector.load %arg4[%c0_7, %c0_8] : memref<8x2xf32, #tpu.memory_space<vmem>>, vector<8x2xf32>
    %7 = arith.truncf %6 : vector<8x2xf32> to vector<8x2xbf16>
    %c0_9 = arith.constant 0 : index
    %c0_10 = arith.constant 0 : index
    %8 = vector.load %arg5[%c0_9, %c0_10] : memref<1x32xf32, #tpu.memory_space<vmem>>, vector<1x32xf32>
    %c0_11 = arith.constant 0 : index
    %c0_12 = arith.constant 0 : index
    %9 = vector.load %arg6[%c0_11, %c0_12] : memref<1x32xf32, #tpu.memory_space<vmem>>, vector<1x32xf32>
    %c0_13 = arith.constant 0 : index
    %c0_14 = arith.constant 0 : index
    %10 = vector.load %arg7[%c0_13, %c0_14] : memref<1x32xf32, #tpu.memory_space<vmem>>, vector<1x32xf32>
    %11 = arith.truncf %3 : vector<16x8xf32> to vector<16x8xbf16>
    %cst = arith.constant dense<0.000000e+00> : vector<16x34xf32>
    %12 = tpu.matmul %11, %5, %cst {dimension_numbers = #tpu.dot_dimension_numbers<[1], [0], [0], [1], [0, 0, 1, 1], [], []>} : vector<16x8xbf16>, vector<8x34xbf16>, vector<16x34xf32> -> vector<16x34xf32>
    %13 = vector.extract_strided_slice %12 {offsets = [0, 0], sizes = [16, 32], strides = [1, 1]} : vector<16x34xf32> to vector<16x32xf32>
    %14 = vector.extract_strided_slice %12 {offsets = [0, 32], sizes = [16, 2], strides = [1, 1]} : vector<16x34xf32> to vector<16x2xf32>
    %cst_15 = arith.constant dense<0.000000e+00> : vector<2x16xf32>
    %15 = tpu.matmul %7, %11, %cst_15 {dimension_numbers = #tpu.dot_dimension_numbers<[0], [1], [1], [0], [0, 1, 1, 0], [], []>} : vector<8x2xbf16>, vector<16x8xbf16>, vector<2x16xf32> -> vector<2x16xf32>
    %16 = vector.extract_strided_slice %14 {offsets = [0, 0], sizes = [16, 1], strides = [1, 1]} : vector<16x2xf32> to vector<16x1xf32>
    %17 = vector.extract_strided_slice %15 {offsets = [0, 0], sizes = [1, 16], strides = [1, 1]} : vector<2x16xf32> to vector<1x16xf32>
    %18 = vector.broadcast %16 : vector<16x1xf32> to vector<16x16xf32>
    %19 = vector.broadcast %17 : vector<1x16xf32> to vector<16x16xf32>
    %20 = arith.addf %18, %19 : vector<16x16xf32>
    %cst_16 = arith.constant 2.000000e-01 : f32
    %21 = vector.broadcast %cst_16 : f32 to vector<16x16xf32>
    %22 = arith.mulf %21, %20 : vector<16x16xf32>
    %23 = arith.maximumf %20, %22 : vector<16x16xf32>
    %24 = arith.addf %23, %1 : vector<16x16xf32>
    %cst_17 = arith.constant dense<0xFF800000> : vector<16xf32>
    %25 = vector.multi_reduction <maximumf>, %24, %cst_17 [1] : vector<16x16xf32> to vector<16xf32>
    %26 = vector.shape_cast %25 : vector<16xf32> to vector<16x1xf32>
    %27 = vector.broadcast %26 : vector<16x1xf32> to vector<16x16xf32>
    %28 = arith.subf %24, %27 : vector<16x16xf32>
    %29 = math.exp %28 : vector<16x16xf32>
    %cst_18 = arith.constant dense<0.000000e+00> : vector<16xf32>
    %30 = vector.multi_reduction <add>, %29, %cst_18 [1] : vector<16x16xf32> to vector<16xf32>
    %31 = vector.shape_cast %30 : vector<16xf32> to vector<16x1xf32>
    %32 = tpu.reciprocal %31 {approx = true} : vector<16x1xf32> -> vector<16x1xf32>
    %33 = vector.broadcast %32 : vector<16x1xf32> to vector<16x16xf32>
    %34 = arith.mulf %29, %33 : vector<16x16xf32>
    %35 = vector.extract_strided_slice %14 {offsets = [0, 1], sizes = [16, 1], strides = [1, 1]} : vector<16x2xf32> to vector<16x1xf32>
    %36 = vector.extract_strided_slice %15 {offsets = [1, 0], sizes = [1, 16], strides = [1, 1]} : vector<2x16xf32> to vector<1x16xf32>
    %37 = vector.broadcast %35 : vector<16x1xf32> to vector<16x16xf32>
    %38 = vector.broadcast %36 : vector<1x16xf32> to vector<16x16xf32>
    %39 = arith.addf %37, %38 : vector<16x16xf32>
    %cst_19 = arith.constant 2.000000e-01 : f32
    %40 = vector.broadcast %cst_19 : f32 to vector<16x16xf32>
    %41 = arith.mulf %40, %39 : vector<16x16xf32>
    %42 = arith.maximumf %39, %41 : vector<16x16xf32>
    %43 = arith.addf %42, %1 : vector<16x16xf32>
    %cst_20 = arith.constant dense<0xFF800000> : vector<16xf32>
    %44 = vector.multi_reduction <maximumf>, %43, %cst_20 [1] : vector<16x16xf32> to vector<16xf32>
    %45 = vector.shape_cast %44 : vector<16xf32> to vector<16x1xf32>
    %46 = vector.broadcast %45 : vector<16x1xf32> to vector<16x16xf32>
    %47 = arith.subf %43, %46 : vector<16x16xf32>
    %48 = math.exp %47 : vector<16x16xf32>
    %cst_21 = arith.constant dense<0.000000e+00> : vector<16xf32>
    %49 = vector.multi_reduction <add>, %48, %cst_21 [1] : vector<16x16xf32> to vector<16xf32>
    %50 = vector.shape_cast %49 : vector<16xf32> to vector<16x1xf32>
    %51 = tpu.reciprocal %50 {approx = true} : vector<16x1xf32> -> vector<16x1xf32>
    %52 = vector.broadcast %51 : vector<16x1xf32> to vector<16x16xf32>
    %53 = arith.mulf %48, %52 : vector<16x16xf32>
    %54 = tpu.concatenate %34, %53 in 1 : vector<16x16xf32>, vector<16x16xf32> -> vector<16x32xf32>
    %55 = tpu.concatenate %13, %13 in 0 : vector<16x32xf32>, vector<16x32xf32> -> vector<32x32xf32>
    %56 = arith.mulf %55, %2 : vector<32x32xf32>
    %57 = arith.truncf %54 : vector<16x32xf32> to vector<16x32xbf16>
    %58 = arith.truncf %56 : vector<32x32xf32> to vector<32x32xbf16>
    %cst_22 = arith.constant dense<0.000000e+00> : vector<16x32xf32>
    %59 = tpu.matmul %57, %58, %cst_22 {dimension_numbers = #tpu.dot_dimension_numbers<[1], [0], [0], [1], [0, 0, 1, 1], [], []>} : vector<16x32xbf16>, vector<32x32xbf16>, vector<16x32xf32> -> vector<16x32xf32>
    %60 = vector.broadcast %8 : vector<1x32xf32> to vector<16x32xf32>
    %61 = arith.addf %59, %60 : vector<16x32xf32>
    %cst_23 = arith.constant dense<0.000000e+00> : vector<16xf32>
    %62 = vector.multi_reduction <add>, %61, %cst_23 [1] : vector<16x32xf32> to vector<16xf32>
    %63 = vector.shape_cast %62 : vector<16xf32> to vector<16x1xf32>
    %cst_24 = arith.constant 3.200000e+01 : f32
    %64 = vector.broadcast %cst_24 : f32 to vector<16x1xf32>
    %65 = arith.divf %63, %64 : vector<16x1xf32>
    %66 = vector.broadcast %65 : vector<16x1xf32> to vector<16x32xf32>
    %67 = arith.subf %61, %66 : vector<16x32xf32>
    %68 = arith.mulf %67, %67 : vector<16x32xf32>
    %cst_25 = arith.constant dense<0.000000e+00> : vector<16xf32>
    %69 = vector.multi_reduction <add>, %68, %cst_25 [1] : vector<16x32xf32> to vector<16xf32>
    %70 = vector.shape_cast %69 : vector<16xf32> to vector<16x1xf32>
    %cst_26 = arith.constant 3.200000e+01 : f32
    %71 = vector.broadcast %cst_26 : f32 to vector<16x1xf32>
    %72 = arith.divf %70, %71 : vector<16x1xf32>
    %cst_27 = arith.constant 9.99999974E-6 : f32
    %73 = vector.broadcast %cst_27 : f32 to vector<16x1xf32>
    %74 = arith.addf %72, %73 : vector<16x1xf32>
    %75 = math.rsqrt %74 : vector<16x1xf32>
    %76 = vector.broadcast %75 : vector<16x1xf32> to vector<16x32xf32>
    %77 = arith.mulf %67, %76 : vector<16x32xf32>
    %78 = vector.broadcast %9 : vector<1x32xf32> to vector<16x32xf32>
    %79 = arith.mulf %77, %78 : vector<16x32xf32>
    %80 = vector.broadcast %10 : vector<1x32xf32> to vector<16x32xf32>
    %81 = arith.addf %79, %80 : vector<16x32xf32>
    %cst_28 = arith.constant 0.000000e+00 : f32
    %82 = vector.broadcast %cst_28 : f32 to vector<16x32xf32>
    %83 = arith.cmpf ogt, %81, %82 : vector<16x32xf32>
    %84 = math.exp %81 : vector<16x32xf32>
    %cst_29 = arith.constant 1.000000e+00 : f32
    %85 = vector.broadcast %cst_29 : f32 to vector<16x32xf32>
    %86 = arith.subf %84, %85 : vector<16x32xf32>
    %87 = arith.select %83, %81, %86 : vector<16x32xi1>, vector<16x32xf32>
    %c0_30 = arith.constant 0 : index
    %c0_31 = arith.constant 0 : index
    %88 = vector.load %arg8[%c0_30, %c0_31] : memref<32x34xf32, #tpu.memory_space<vmem>>, vector<32x34xf32>
    %89 = arith.truncf %88 : vector<32x34xf32> to vector<32x34xbf16>
    %c0_32 = arith.constant 0 : index
    %c0_33 = arith.constant 0 : index
    %90 = vector.load %arg9[%c0_32, %c0_33] : memref<32x2xf32, #tpu.memory_space<vmem>>, vector<32x2xf32>
    %91 = arith.truncf %90 : vector<32x2xf32> to vector<32x2xbf16>
    %c0_34 = arith.constant 0 : index
    %c0_35 = arith.constant 0 : index
    %92 = vector.load %arg10[%c0_34, %c0_35] : memref<1x32xf32, #tpu.memory_space<vmem>>, vector<1x32xf32>
    %c0_36 = arith.constant 0 : index
    %c0_37 = arith.constant 0 : index
    %93 = vector.load %arg11[%c0_36, %c0_37] : memref<1x32xf32, #tpu.memory_space<vmem>>, vector<1x32xf32>
    %c0_38 = arith.constant 0 : index
    %c0_39 = arith.constant 0 : index
    %94 = vector.load %arg12[%c0_38, %c0_39] : memref<1x32xf32, #tpu.memory_space<vmem>>, vector<1x32xf32>
    %95 = arith.truncf %87 : vector<16x32xf32> to vector<16x32xbf16>
    %cst_40 = arith.constant dense<0.000000e+00> : vector<16x34xf32>
    %96 = tpu.matmul %95, %89, %cst_40 {dimension_numbers = #tpu.dot_dimension_numbers<[1], [0], [0], [1], [0, 0, 1, 1], [], []>} : vector<16x32xbf16>, vector<32x34xbf16>, vector<16x34xf32> -> vector<16x34xf32>
    %97 = vector.extract_strided_slice %96 {offsets = [0, 0], sizes = [16, 32], strides = [1, 1]} : vector<16x34xf32> to vector<16x32xf32>
    %98 = vector.extract_strided_slice %96 {offsets = [0, 32], sizes = [16, 2], strides = [1, 1]} : vector<16x34xf32> to vector<16x2xf32>
    %cst_41 = arith.constant dense<0.000000e+00> : vector<2x16xf32>
    %99 = tpu.matmul %91, %95, %cst_41 {dimension_numbers = #tpu.dot_dimension_numbers<[0], [1], [1], [0], [0, 1, 1, 0], [], []>} : vector<32x2xbf16>, vector<16x32xbf16>, vector<2x16xf32> -> vector<2x16xf32>
    %100 = vector.extract_strided_slice %98 {offsets = [0, 0], sizes = [16, 1], strides = [1, 1]} : vector<16x2xf32> to vector<16x1xf32>
    %101 = vector.extract_strided_slice %99 {offsets = [0, 0], sizes = [1, 16], strides = [1, 1]} : vector<2x16xf32> to vector<1x16xf32>
    %102 = vector.broadcast %100 : vector<16x1xf32> to vector<16x16xf32>
    %103 = vector.broadcast %101 : vector<1x16xf32> to vector<16x16xf32>
    %104 = arith.addf %102, %103 : vector<16x16xf32>
    %cst_42 = arith.constant 2.000000e-01 : f32
    %105 = vector.broadcast %cst_42 : f32 to vector<16x16xf32>
    %106 = arith.mulf %105, %104 : vector<16x16xf32>
    %107 = arith.maximumf %104, %106 : vector<16x16xf32>
    %108 = arith.addf %107, %1 : vector<16x16xf32>
    %cst_43 = arith.constant dense<0xFF800000> : vector<16xf32>
    %109 = vector.multi_reduction <maximumf>, %108, %cst_43 [1] : vector<16x16xf32> to vector<16xf32>
    %110 = vector.shape_cast %109 : vector<16xf32> to vector<16x1xf32>
    %111 = vector.broadcast %110 : vector<16x1xf32> to vector<16x16xf32>
    %112 = arith.subf %108, %111 : vector<16x16xf32>
    %113 = math.exp %112 : vector<16x16xf32>
    %cst_44 = arith.constant dense<0.000000e+00> : vector<16xf32>
    %114 = vector.multi_reduction <add>, %113, %cst_44 [1] : vector<16x16xf32> to vector<16xf32>
    %115 = vector.shape_cast %114 : vector<16xf32> to vector<16x1xf32>
    %116 = tpu.reciprocal %115 {approx = true} : vector<16x1xf32> -> vector<16x1xf32>
    %117 = vector.broadcast %116 : vector<16x1xf32> to vector<16x16xf32>
    %118 = arith.mulf %113, %117 : vector<16x16xf32>
    %119 = vector.extract_strided_slice %98 {offsets = [0, 1], sizes = [16, 1], strides = [1, 1]} : vector<16x2xf32> to vector<16x1xf32>
    %120 = vector.extract_strided_slice %99 {offsets = [1, 0], sizes = [1, 16], strides = [1, 1]} : vector<2x16xf32> to vector<1x16xf32>
    %121 = vector.broadcast %119 : vector<16x1xf32> to vector<16x16xf32>
    %122 = vector.broadcast %120 : vector<1x16xf32> to vector<16x16xf32>
    %123 = arith.addf %121, %122 : vector<16x16xf32>
    %cst_45 = arith.constant 2.000000e-01 : f32
    %124 = vector.broadcast %cst_45 : f32 to vector<16x16xf32>
    %125 = arith.mulf %124, %123 : vector<16x16xf32>
    %126 = arith.maximumf %123, %125 : vector<16x16xf32>
    %127 = arith.addf %126, %1 : vector<16x16xf32>
    %cst_46 = arith.constant dense<0xFF800000> : vector<16xf32>
    %128 = vector.multi_reduction <maximumf>, %127, %cst_46 [1] : vector<16x16xf32> to vector<16xf32>
    %129 = vector.shape_cast %128 : vector<16xf32> to vector<16x1xf32>
    %130 = vector.broadcast %129 : vector<16x1xf32> to vector<16x16xf32>
    %131 = arith.subf %127, %130 : vector<16x16xf32>
    %132 = math.exp %131 : vector<16x16xf32>
    %cst_47 = arith.constant dense<0.000000e+00> : vector<16xf32>
    %133 = vector.multi_reduction <add>, %132, %cst_47 [1] : vector<16x16xf32> to vector<16xf32>
    %134 = vector.shape_cast %133 : vector<16xf32> to vector<16x1xf32>
    %135 = tpu.reciprocal %134 {approx = true} : vector<16x1xf32> -> vector<16x1xf32>
    %136 = vector.broadcast %135 : vector<16x1xf32> to vector<16x16xf32>
    %137 = arith.mulf %132, %136 : vector<16x16xf32>
    %138 = tpu.concatenate %118, %137 in 1 : vector<16x16xf32>, vector<16x16xf32> -> vector<16x32xf32>
    %139 = tpu.concatenate %97, %97 in 0 : vector<16x32xf32>, vector<16x32xf32> -> vector<32x32xf32>
    %140 = arith.mulf %139, %2 : vector<32x32xf32>
    %141 = arith.truncf %138 : vector<16x32xf32> to vector<16x32xbf16>
    %142 = arith.truncf %140 : vector<32x32xf32> to vector<32x32xbf16>
    %cst_48 = arith.constant dense<0.000000e+00> : vector<16x32xf32>
    %143 = tpu.matmul %141, %142, %cst_48 {dimension_numbers = #tpu.dot_dimension_numbers<[1], [0], [0], [1], [0, 0, 1, 1], [], []>} : vector<16x32xbf16>, vector<32x32xbf16>, vector<16x32xf32> -> vector<16x32xf32>
    %144 = vector.broadcast %92 : vector<1x32xf32> to vector<16x32xf32>
    %145 = arith.addf %143, %144 : vector<16x32xf32>
    %cst_49 = arith.constant dense<0.000000e+00> : vector<16xf32>
    %146 = vector.multi_reduction <add>, %145, %cst_49 [1] : vector<16x32xf32> to vector<16xf32>
    %147 = vector.shape_cast %146 : vector<16xf32> to vector<16x1xf32>
    %cst_50 = arith.constant 3.200000e+01 : f32
    %148 = vector.broadcast %cst_50 : f32 to vector<16x1xf32>
    %149 = arith.divf %147, %148 : vector<16x1xf32>
    %150 = vector.broadcast %149 : vector<16x1xf32> to vector<16x32xf32>
    %151 = arith.subf %145, %150 : vector<16x32xf32>
    %152 = arith.mulf %151, %151 : vector<16x32xf32>
    %cst_51 = arith.constant dense<0.000000e+00> : vector<16xf32>
    %153 = vector.multi_reduction <add>, %152, %cst_51 [1] : vector<16x32xf32> to vector<16xf32>
    %154 = vector.shape_cast %153 : vector<16xf32> to vector<16x1xf32>
    %cst_52 = arith.constant 3.200000e+01 : f32
    %155 = vector.broadcast %cst_52 : f32 to vector<16x1xf32>
    %156 = arith.divf %154, %155 : vector<16x1xf32>
    %cst_53 = arith.constant 9.99999974E-6 : f32
    %157 = vector.broadcast %cst_53 : f32 to vector<16x1xf32>
    %158 = arith.addf %156, %157 : vector<16x1xf32>
    %159 = math.rsqrt %158 : vector<16x1xf32>
    %160 = vector.broadcast %159 : vector<16x1xf32> to vector<16x32xf32>
    %161 = arith.mulf %151, %160 : vector<16x32xf32>
    %162 = vector.broadcast %93 : vector<1x32xf32> to vector<16x32xf32>
    %163 = arith.mulf %161, %162 : vector<16x32xf32>
    %164 = vector.broadcast %94 : vector<1x32xf32> to vector<16x32xf32>
    %165 = arith.addf %163, %164 : vector<16x32xf32>
    %cst_54 = arith.constant 0.000000e+00 : f32
    %166 = vector.broadcast %cst_54 : f32 to vector<16x32xf32>
    %167 = arith.cmpf ogt, %165, %166 : vector<16x32xf32>
    %168 = math.exp %165 : vector<16x32xf32>
    %cst_55 = arith.constant 1.000000e+00 : f32
    %169 = vector.broadcast %cst_55 : f32 to vector<16x32xf32>
    %170 = arith.subf %168, %169 : vector<16x32xf32>
    %171 = arith.select %167, %165, %170 : vector<16x32xi1>, vector<16x32xf32>
    %c0_56 = arith.constant 0 : index
    %c0_57 = arith.constant 0 : index
    %172 = vector.load %arg13[%c0_56, %c0_57] : memref<32x34xf32, #tpu.memory_space<vmem>>, vector<32x34xf32>
    %173 = arith.truncf %172 : vector<32x34xf32> to vector<32x34xbf16>
    %c0_58 = arith.constant 0 : index
    %c0_59 = arith.constant 0 : index
    %174 = vector.load %arg14[%c0_58, %c0_59] : memref<32x2xf32, #tpu.memory_space<vmem>>, vector<32x2xf32>
    %175 = arith.truncf %174 : vector<32x2xf32> to vector<32x2xbf16>
    %c0_60 = arith.constant 0 : index
    %c0_61 = arith.constant 0 : index
    %176 = vector.load %arg15[%c0_60, %c0_61] : memref<1x32xf32, #tpu.memory_space<vmem>>, vector<1x32xf32>
    %c0_62 = arith.constant 0 : index
    %c0_63 = arith.constant 0 : index
    %177 = vector.load %arg16[%c0_62, %c0_63] : memref<1x32xf32, #tpu.memory_space<vmem>>, vector<1x32xf32>
    %c0_64 = arith.constant 0 : index
    %c0_65 = arith.constant 0 : index
    %178 = vector.load %arg17[%c0_64, %c0_65] : memref<1x32xf32, #tpu.memory_space<vmem>>, vector<1x32xf32>
    %179 = arith.truncf %171 : vector<16x32xf32> to vector<16x32xbf16>
    %cst_66 = arith.constant dense<0.000000e+00> : vector<16x34xf32>
    %180 = tpu.matmul %179, %173, %cst_66 {dimension_numbers = #tpu.dot_dimension_numbers<[1], [0], [0], [1], [0, 0, 1, 1], [], []>} : vector<16x32xbf16>, vector<32x34xbf16>, vector<16x34xf32> -> vector<16x34xf32>
    %181 = vector.extract_strided_slice %180 {offsets = [0, 0], sizes = [16, 32], strides = [1, 1]} : vector<16x34xf32> to vector<16x32xf32>
    %182 = vector.extract_strided_slice %180 {offsets = [0, 32], sizes = [16, 2], strides = [1, 1]} : vector<16x34xf32> to vector<16x2xf32>
    %cst_67 = arith.constant dense<0.000000e+00> : vector<2x16xf32>
    %183 = tpu.matmul %175, %179, %cst_67 {dimension_numbers = #tpu.dot_dimension_numbers<[0], [1], [1], [0], [0, 1, 1, 0], [], []>} : vector<32x2xbf16>, vector<16x32xbf16>, vector<2x16xf32> -> vector<2x16xf32>
    %184 = vector.extract_strided_slice %182 {offsets = [0, 0], sizes = [16, 1], strides = [1, 1]} : vector<16x2xf32> to vector<16x1xf32>
    %185 = vector.extract_strided_slice %183 {offsets = [0, 0], sizes = [1, 16], strides = [1, 1]} : vector<2x16xf32> to vector<1x16xf32>
    %186 = vector.broadcast %184 : vector<16x1xf32> to vector<16x16xf32>
    %187 = vector.broadcast %185 : vector<1x16xf32> to vector<16x16xf32>
    %188 = arith.addf %186, %187 : vector<16x16xf32>
    %cst_68 = arith.constant 2.000000e-01 : f32
    %189 = vector.broadcast %cst_68 : f32 to vector<16x16xf32>
    %190 = arith.mulf %189, %188 : vector<16x16xf32>
    %191 = arith.maximumf %188, %190 : vector<16x16xf32>
    %192 = arith.addf %191, %1 : vector<16x16xf32>
    %cst_69 = arith.constant dense<0xFF800000> : vector<16xf32>
    %193 = vector.multi_reduction <maximumf>, %192, %cst_69 [1] : vector<16x16xf32> to vector<16xf32>
    %194 = vector.shape_cast %193 : vector<16xf32> to vector<16x1xf32>
    %195 = vector.broadcast %194 : vector<16x1xf32> to vector<16x16xf32>
    %196 = arith.subf %192, %195 : vector<16x16xf32>
    %197 = math.exp %196 : vector<16x16xf32>
    %cst_70 = arith.constant dense<0.000000e+00> : vector<16xf32>
    %198 = vector.multi_reduction <add>, %197, %cst_70 [1] : vector<16x16xf32> to vector<16xf32>
    %199 = vector.shape_cast %198 : vector<16xf32> to vector<16x1xf32>
    %200 = tpu.reciprocal %199 {approx = true} : vector<16x1xf32> -> vector<16x1xf32>
    %201 = vector.broadcast %200 : vector<16x1xf32> to vector<16x16xf32>
    %202 = arith.mulf %197, %201 : vector<16x16xf32>
    %203 = vector.extract_strided_slice %182 {offsets = [0, 1], sizes = [16, 1], strides = [1, 1]} : vector<16x2xf32> to vector<16x1xf32>
    %204 = vector.extract_strided_slice %183 {offsets = [1, 0], sizes = [1, 16], strides = [1, 1]} : vector<2x16xf32> to vector<1x16xf32>
    %205 = vector.broadcast %203 : vector<16x1xf32> to vector<16x16xf32>
    %206 = vector.broadcast %204 : vector<1x16xf32> to vector<16x16xf32>
    %207 = arith.addf %205, %206 : vector<16x16xf32>
    %cst_71 = arith.constant 2.000000e-01 : f32
    %208 = vector.broadcast %cst_71 : f32 to vector<16x16xf32>
    %209 = arith.mulf %208, %207 : vector<16x16xf32>
    %210 = arith.maximumf %207, %209 : vector<16x16xf32>
    %211 = arith.addf %210, %1 : vector<16x16xf32>
    %cst_72 = arith.constant dense<0xFF800000> : vector<16xf32>
    %212 = vector.multi_reduction <maximumf>, %211, %cst_72 [1] : vector<16x16xf32> to vector<16xf32>
    %213 = vector.shape_cast %212 : vector<16xf32> to vector<16x1xf32>
    %214 = vector.broadcast %213 : vector<16x1xf32> to vector<16x16xf32>
    %215 = arith.subf %211, %214 : vector<16x16xf32>
    %216 = math.exp %215 : vector<16x16xf32>
    %cst_73 = arith.constant dense<0.000000e+00> : vector<16xf32>
    %217 = vector.multi_reduction <add>, %216, %cst_73 [1] : vector<16x16xf32> to vector<16xf32>
    %218 = vector.shape_cast %217 : vector<16xf32> to vector<16x1xf32>
    %219 = tpu.reciprocal %218 {approx = true} : vector<16x1xf32> -> vector<16x1xf32>
    %220 = vector.broadcast %219 : vector<16x1xf32> to vector<16x16xf32>
    %221 = arith.mulf %216, %220 : vector<16x16xf32>
    %222 = tpu.concatenate %202, %221 in 1 : vector<16x16xf32>, vector<16x16xf32> -> vector<16x32xf32>
    %223 = tpu.concatenate %181, %181 in 0 : vector<16x32xf32>, vector<16x32xf32> -> vector<32x32xf32>
    %224 = arith.mulf %223, %2 : vector<32x32xf32>
    %225 = arith.truncf %222 : vector<16x32xf32> to vector<16x32xbf16>
    %226 = arith.truncf %224 : vector<32x32xf32> to vector<32x32xbf16>
    %cst_74 = arith.constant dense<0.000000e+00> : vector<16x32xf32>
    %227 = tpu.matmul %225, %226, %cst_74 {dimension_numbers = #tpu.dot_dimension_numbers<[1], [0], [0], [1], [0, 0, 1, 1], [], []>} : vector<16x32xbf16>, vector<32x32xbf16>, vector<16x32xf32> -> vector<16x32xf32>
    %228 = vector.broadcast %176 : vector<1x32xf32> to vector<16x32xf32>
    %229 = arith.addf %227, %228 : vector<16x32xf32>
    %cst_75 = arith.constant dense<0.000000e+00> : vector<16xf32>
    %230 = vector.multi_reduction <add>, %229, %cst_75 [1] : vector<16x32xf32> to vector<16xf32>
    %231 = vector.shape_cast %230 : vector<16xf32> to vector<16x1xf32>
    %cst_76 = arith.constant 3.200000e+01 : f32
    %232 = vector.broadcast %cst_76 : f32 to vector<16x1xf32>
    %233 = arith.divf %231, %232 : vector<16x1xf32>
    %234 = vector.broadcast %233 : vector<16x1xf32> to vector<16x32xf32>
    %235 = arith.subf %229, %234 : vector<16x32xf32>
    %236 = arith.mulf %235, %235 : vector<16x32xf32>
    %cst_77 = arith.constant dense<0.000000e+00> : vector<16xf32>
    %237 = vector.multi_reduction <add>, %236, %cst_77 [1] : vector<16x32xf32> to vector<16xf32>
    %238 = vector.shape_cast %237 : vector<16xf32> to vector<16x1xf32>
    %cst_78 = arith.constant 3.200000e+01 : f32
    %239 = vector.broadcast %cst_78 : f32 to vector<16x1xf32>
    %240 = arith.divf %238, %239 : vector<16x1xf32>
    %cst_79 = arith.constant 9.99999974E-6 : f32
    %241 = vector.broadcast %cst_79 : f32 to vector<16x1xf32>
    %242 = arith.addf %240, %241 : vector<16x1xf32>
    %243 = math.rsqrt %242 : vector<16x1xf32>
    %244 = vector.broadcast %243 : vector<16x1xf32> to vector<16x32xf32>
    %245 = arith.mulf %235, %244 : vector<16x32xf32>
    %246 = vector.broadcast %177 : vector<1x32xf32> to vector<16x32xf32>
    %247 = arith.mulf %245, %246 : vector<16x32xf32>
    %248 = vector.broadcast %178 : vector<1x32xf32> to vector<16x32xf32>
    %249 = arith.addf %247, %248 : vector<16x32xf32>
    %cst_80 = arith.constant 0.000000e+00 : f32
    %250 = vector.broadcast %cst_80 : f32 to vector<16x32xf32>
    %251 = arith.cmpf ogt, %249, %250 : vector<16x32xf32>
    %252 = math.exp %249 : vector<16x32xf32>
    %cst_81 = arith.constant 1.000000e+00 : f32
    %253 = vector.broadcast %cst_81 : f32 to vector<16x32xf32>
    %254 = arith.subf %252, %253 : vector<16x32xf32>
    %255 = arith.select %251, %249, %254 : vector<16x32xi1>, vector<16x32xf32>
    %c0_82 = arith.constant 0 : index
    %c0_83 = arith.constant 0 : index
    %256 = vector.load %arg18[%c0_82, %c0_83] : memref<32x129xf32, #tpu.memory_space<vmem>>, vector<32x129xf32>
    %257 = arith.truncf %256 : vector<32x129xf32> to vector<32x129xbf16>
    %c0_84 = arith.constant 0 : index
    %c0_85 = arith.constant 0 : index
    %258 = vector.load %arg19[%c0_84, %c0_85] : memref<32x1xf32, #tpu.memory_space<vmem>>, vector<32x1xf32>
    %259 = arith.truncf %258 : vector<32x1xf32> to vector<32x1xbf16>
    %c0_86 = arith.constant 0 : index
    %c0_87 = arith.constant 0 : index
    %260 = vector.load %arg20[%c0_86, %c0_87] : memref<1x128xf32, #tpu.memory_space<vmem>>, vector<1x128xf32>
    %261 = arith.truncf %255 : vector<16x32xf32> to vector<16x32xbf16>
    %cst_88 = arith.constant dense<0.000000e+00> : vector<16x129xf32>
    %262 = tpu.matmul %261, %257, %cst_88 {dimension_numbers = #tpu.dot_dimension_numbers<[1], [0], [0], [1], [0, 0, 1, 1], [], []>} : vector<16x32xbf16>, vector<32x129xbf16>, vector<16x129xf32> -> vector<16x129xf32>
    %263 = vector.extract_strided_slice %262 {offsets = [0, 0], sizes = [16, 128], strides = [1, 1]} : vector<16x129xf32> to vector<16x128xf32>
    %264 = vector.extract_strided_slice %262 {offsets = [0, 128], sizes = [16, 1], strides = [1, 1]} : vector<16x129xf32> to vector<16x1xf32>
    %cst_89 = arith.constant dense<0.000000e+00> : vector<1x16xf32>
    %265 = tpu.matmul %259, %261, %cst_89 {dimension_numbers = #tpu.dot_dimension_numbers<[0], [1], [1], [0], [0, 1, 1, 0], [], []>} : vector<32x1xbf16>, vector<16x32xbf16>, vector<1x16xf32> -> vector<1x16xf32>
    %266 = vector.broadcast %264 : vector<16x1xf32> to vector<16x16xf32>
    %267 = vector.broadcast %265 : vector<1x16xf32> to vector<16x16xf32>
    %268 = arith.addf %266, %267 : vector<16x16xf32>
    %cst_90 = arith.constant 2.000000e-01 : f32
    %269 = vector.broadcast %cst_90 : f32 to vector<16x16xf32>
    %270 = arith.mulf %269, %268 : vector<16x16xf32>
    %271 = arith.maximumf %268, %270 : vector<16x16xf32>
    %272 = arith.addf %271, %1 : vector<16x16xf32>
    %cst_91 = arith.constant dense<0xFF800000> : vector<16xf32>
    %273 = vector.multi_reduction <maximumf>, %272, %cst_91 [1] : vector<16x16xf32> to vector<16xf32>
    %274 = vector.shape_cast %273 : vector<16xf32> to vector<16x1xf32>
    %275 = vector.broadcast %274 : vector<16x1xf32> to vector<16x16xf32>
    %276 = arith.subf %272, %275 : vector<16x16xf32>
    %277 = math.exp %276 : vector<16x16xf32>
    %cst_92 = arith.constant dense<0.000000e+00> : vector<16xf32>
    %278 = vector.multi_reduction <add>, %277, %cst_92 [1] : vector<16x16xf32> to vector<16xf32>
    %279 = vector.shape_cast %278 : vector<16xf32> to vector<16x1xf32>
    %280 = tpu.reciprocal %279 {approx = true} : vector<16x1xf32> -> vector<16x1xf32>
    %281 = vector.broadcast %280 : vector<16x1xf32> to vector<16x16xf32>
    %282 = arith.mulf %277, %281 : vector<16x16xf32>
    %283 = arith.truncf %282 : vector<16x16xf32> to vector<16x16xbf16>
    %284 = arith.truncf %263 : vector<16x128xf32> to vector<16x128xbf16>
    %cst_93 = arith.constant dense<0.000000e+00> : vector<16x128xf32>
    %285 = tpu.matmul %283, %284, %cst_93 {dimension_numbers = #tpu.dot_dimension_numbers<[1], [0], [0], [1], [0, 0, 1, 1], [], []>} : vector<16x16xbf16>, vector<16x128xbf16>, vector<16x128xf32> -> vector<16x128xf32>
    %286 = vector.broadcast %260 : vector<1x128xf32> to vector<16x128xf32>
    %287 = arith.addf %285, %286 : vector<16x128xf32>
    %c0_94 = arith.constant 0 : index
    %c0_95 = arith.constant 0 : index
    %288 = vector.load %arg21[%c0_94, %c0_95] : memref<16x128xf32, #tpu.memory_space<vmem>>, vector<16x128xf32>
    tpu.vector_store %arg21[%c0_94, %c0_95], %287 {strides = array<i32>} : memref<16x128xf32, #tpu.memory_space<vmem>>, vector<16x128xf32>,
    return
  }
}

</mosaic_0001>

<bundles_post_ra>
// kernel: eq.8
= control target key start
LH: loop header
LB: loop body
LE: loop exit
PB: predicated region body
PF: predicated region fallthrough
CT: control target
= control target key end

     0   :  { %vm7_vm0 = vcmask 130048   ;;  %vm13_vm1 = vcmask 261248   ;;  %s39_s0 = inlined_call_operand.vmem [shape: s32[2,16], index: 0, kind: input, shape index: {}]   ;;  %s40_s1 = inlined_call_operand.vmem [shape: s32[32], index: 1, kind: output, shape index: {}]  }
   0x1   :  { %v4_v0 = vld [vmem:[%s39_s0] sm:$0x3]  ;;  %s22_s0 = smov 16  }
   0x2   :  { %5 = vst [vmem:[#allocation1] sm:$0x3] %v4_v0 }
   0x9   :  { %v10_v1 = vld [vmem:[#allocation1 + $0x1] sm:$0x1]   ;;  %v6_v2 = vld [vmem:[#allocation1] sm:$0x1]  }
   0xa   :  { %11 = vrot.lane.b32.xlu0 %v10_v1, %s22_s0  ;;  %8 = vst.msk [vmem:[#allocation0] sm:$0x1] %vm7_vm0, %v6_v2  }
  0x7c   :  { %v12_v3 = vpop.permute.xlu0 %11  }
  0x7d   :  { %14 = vst.msk [vmem:[#allocation0] sm:$0x1] %vm13_vm1, %v12_v3  }
  0x84   :  { %v18_v4 = vld [vmem:[#allocation0] sm:$0x1] }
  0x85   :  { %20 = vst [vmem:[%s40_s1] sm:$0x1] %v18_v4 }

// kernel: gatv2_forward.1
= control target key start
LH: loop header
LB: loop body
LE: loop exit
PB: predicated region body
PF: predicated region fallthrough
CT: control target
= control target key end

     0   :  { %v1524_v0 = vmov 0.0   ;;  %vm91_vm0 = vcmask 1043456   ;;  %vm1525_vm1 = vmmov 0   ;;  %vm87_vm2 = vcmask 64512   ;;  %s1944_s3 = inlined_call_operand.vmem [shape: f32[8,34], index: 3, kind: input, shape index: {}]   ;;  %s1945_s0 = inlined_call_operand.vmem [shape: f32[16,8], index: 0, kind: input, shape index: {}]   ;;  %s1946_s4 = inlined_call_operand.vmem [shape: f32[8,2], index: 4, kind: input, shape index: {}]   ;;  %s1947_s2 = inlined_call_operand.vmem [shape: f32[32,32], index: 2, kind: input, shape index: {}]   ;;  %s1948_s1 = inlined_call_operand.vmem [shape: bf16[16,16], index: 1, kind: input, shape index: {}]   ;;  %s1949_s5 = inlined_call_operand.vmem [shape: f32[1,32], index: 5, kind: input, shape index: {}]   ;;  %s1950_s8 = inlined_call_operand.vmem [shape: f32[32,34], index: 8, kind: input, shape index: {}]   ;;  %s1951_s9 = inlined_call_operand.vmem [shape: f32[32,2], index: 9, kind: input, shape index: {}]   ;;  %s1952_s6 = inlined_call_operand.vmem [shape: f32[1,32], index: 6, kind: input, shape index: {}]   ;;  %s1953_s7 = inlined_call_operand.vmem [shape: f32[1,32], index: 7, kind: input, shape index: {}]   ;;  %s1954_s10 = inlined_call_operand.vmem [shape: f32[1,32], index: 10, kind: input, shape index: {}]   ;;  %s1955_s13 = inlined_call_operand.vmem [shape: f32[32,34], index: 13, kind: input, shape index: {}]   ;;  %s1956_s14 = inlined_call_operand.vmem [shape: f32[32,2], index: 14, kind: input, shape index: {}]   ;;  %s1957_s11 = inlined_call_operand.vmem [shape: f32[1,32], index: 11, kind: input, shape index: {}]   ;;  %s1958_s12 = inlined_call_operand.vmem [shape: f32[1,32], index: 12, kind: input, shape index: {}]   ;;  %s1959_s15 = inlined_call_operand.vmem [shape: f32[1,32], index: 15, kind: input, shape index: {}]   ;;  %s1960_s18 = inlined_call_operand.vmem [shape: f32[32,129], index: 18, kind: input, shape index: {}]   ;;  %s1961_s19 = inlined_call_operand.vmem [shape: f32[32,1], index: 19, kind: input, shape index: {}]   ;;  %s1962_s16 = inlined_call_operand.vmem [shape: f32[1,32], index: 16, kind: input, shape index: {}]   ;;  %s1963_s17 = inlined_call_operand.vmem [shape: f32[1,32], index: 17, kind: input, shape index: {}]   ;;  %s1964_s20 = inlined_call_operand.vmem [shape: f32[1,128], index: 20, kind: input, shape index: {}]   ;;  %s1965_s21 = inlined_call_operand.vmem [shape: f32[16,128], index: 21, kind: output, shape index: {}]  }
   0x1   :  { %1968 = sst [smem:[#allocation2_spill]] %s1944_s3  ;;  %1337 = vmatprep.subr.bf16.mxu0 %v1524_v0  ;;  %1339 = vmatprep.mubr.msk.bf16.mxu0 %vm1525_vm1, %v1524_v0  ;;  %v1526_v8 = vmov 33   ;;  %v1527_v26 = vmov 32   ;;  %v205_v31 = vlaneseq  ;;  %vm217_vm3 = vcmask 130048   ;;  %s1528_s3 = smov 16  }
   0x2   :  { %1969 = sst [smem:[#allocation3_spill]] %s1945_s0  ;;  %s1974_s26 = sld [smem:[#allocation2_spill]]  ;;  %1343 = vmatprep.subr.bf16.mxu1 %v1524_v0  ;;  %1345 = vmatprep.mubr.msk.bf16.mxu1 %vm1525_vm1, %v1524_v0  ;;  %vm305_vm4 = vcmask 261120  }
   0x3   :  { %1970 = sst [smem:[#allocation4_spill]] %s1946_s4  ;;  %s1975_s28 = sld [smem:[#allocation3_spill]]  ;;  %1420 = vset.pattern.permute.xlu1 %v1526_v8  ;;  %v206_v32 = vshrl.u32 %v205_v31, 7 }
   0x4   :  { %1971 = sst [smem:[#allocation5_spill]] %s1947_s2 }
   0x5   :  { %1972 = sst [smem:[#allocation6_spill]] %s1948_s1  ;;  %s1977_s0 = sld [smem:[#allocation5_spill]]  ;;  %v1693_v33 = vsub.s32 1, %v206_v32  ;;  %v1699_v38 = vsub.s32 0, %v206_v32 }
   0x6   :  { %1973 = sst [smem:[#allocation7_spill]] %s1949_s5  ;;  %s1976_s5 = sld [smem:[#allocation4_spill]] }
   0x7   :  { %s1978_s29 = sld [smem:[#allocation6_spill]]  ;;  %s1979_s22 = sld [smem:[#allocation7_spill]] }
   0x8   :  { %v79_v1 = vld [vmem:[%s1974_s26] sm:$0xff] }
   0x9   :  { %v77_v2 = vld [vmem:[%s1975_s28] sm:$0xff]  ;;  %v78_v3 = vld [vmem:[%s1975_s28 + $0x8] sm:$0xff]  ;;  %v80_v4 = vpack.c.bf16 %v79_v1, %v79_v1 }
   0xa   :  { %v86_v5 = vpack.c.bf16 %v78_v3, %v77_v2 }
   0xb   :  { %v93_v9 = vsel %vm91_vm0, %v80_v4, 0  ;;  %v1669_v12 = vld [vmem:[%s1977_s0] sm:$0xff]  ;;  %v1674_v13 = vld [vmem:[%s1977_s0 + $0x10] sm:$0xff]  ;;  %v1679_v15 = vld [vmem:[%s1977_s0 + $0x8] sm:$0xff] }
   0xc   :  { %v81_v6 = vld [vmem:[%s1976_s5] sm:$0xff]  ;;  %v89_v10 = vsel %vm87_vm2, %v86_v5, 0  ;;  %1338 = vmatpush3.bf16.msra.mxu0 %v93_v9  ;;  %v1684_v16 = vld [vmem:[%s1977_s0 + $0x18] sm:$0xff] }
   0xd   :  { %v82_v7 = vpack.c.bf16 %v81_v6, %v81_v6  ;;  %1344 = vmatpush3.bf16.xpose.msra.mxu1 %v89_v10  ;;  %1349 = vmatprep.subr.bf16.mxu0 %v1524_v0  ;;  %v1307_v36 = vld [vmem:[%s1978_s29] sm:$0xff]  }
   0xe   :  { %1357 = vmatprep.subr.bf16.mxu1 %v1524_v0  ;;  %v1701_v42 = vunpack.c.l.bf16 %v1307_v36  ;;  %v1703_v45 = vunpack.c.h.bf16 %v1307_v36 }
   0xf   :  { %136 = vxpose.xlu0.c.b16.start.end [1/1] (short) (narrow) %v82_v7, 16  ;;  %1340 = vmatmul.mubr.msk.bf16.vlgmr.msra.gmra.mrb[0].mxu0 %vm87_vm2, %v86_v5 }
  0x10   :  { %1353 = vmatprep.mubr.msk.bf16.mxu0 %vm1525_vm1, %v1524_v0 }
  0x18   :  { %1419 = vset.pattern.permute.xlu0 %v1526_v8 }
  0x75   :  { %v144_v11 = vpop.trf.xlu0 }
  0x76   :  { %1346 = vmatmul.mubr.msk.bf16.vlgmr.msra.gmra.mrb[0].mxu1 %vm87_vm2, %v144_v11 }
  0x77   :  { %1361 = vmatprep.mubr.msk.bf16.mxu1 %vm1525_vm1, %v1524_v0 }
  0xe2   :  { %v129_v14 = vpop.f32.mrb[0].mxu0 }
  0xe3   :  { %241 = vperm.xlu0 %1419, %v129_v14   ;;  %v1341_v17 = vpop.f32.mrb[1].mxu0  ;;  %v292_v19 = vmul.f32 %v129_v14, %v1669_v12  ;;  %v294_v20 = vmul.f32 %v129_v14, %v1674_v13 }
  0xe4   :  { %v132_v18 = vpop.f32.mrb[2].mxu0 }
  0xe5   :  { %v293_v21 = vmul.f32 %v132_v18, %v1679_v15  ;;  %v295_v22 = vmul.f32 %v132_v18, %v1684_v16  ;;  %245 = vperm.xlu1 %1420, %v132_v18   ;;  %v1342_v23 = vpop.f32.mrb[3].mxu0 }
  0xe7   :  { %v297_v24 = vpack.c.bf16 %v293_v21, %v292_v19  ;;  %v298_v25 = vpack.c.bf16 %v295_v22, %v294_v20 }
  0xe9   :  { %1421 = vset.pattern.permute.xlu1 %v1527_v26  ;;  %1350 = vmatpush3.bf16.msra.mxu0 %v297_v24 }
  0xea   :  { %197 = vperm.xlu1 %1421, %v129_v14   ;;  %1351 = vmatprep.subr.bf16.mxu0 %v1524_v0 }
  0xed   :  { %1352 = vmatpush3.bf16.msra.mxu0 %v298_v25 }
  0xee   :  { %202 = vperm.xlu1 %1421, %v132_v18   ;;  %1365 = vmatprep.subr.bf16.mxu0 %v1524_v0 }
 0x149   :  { %v189_v27 = vpop.f32.mrb[0].mxu1 }
 0x14a   :  { %v1347_v28 = vpop.f32.mrb[1].mxu1  ;;  %v251_v34 = vrot.slane %v189_v27, %v1693_v33  ;;  %v208_v46 = vrot.slane %v189_v27, %v1699_v38 }
 0x14b   :  { %v192_v29 = vpop.f32.mrb[2].mxu1 }
 0x14c   :  { %v1348_v30 = vpop.f32.mrb[3].mxu1 }
 0x162   :  { %v242_v35 = vpop.permute.xlu0 %241 }
 0x163   :  { %v252_v37 = vadd.f32 %v251_v34, %v242_v35 }
 0x164   :  { %v246_v39 = vpop.permute.xlu1 %245 }
 0x165   :  { %v254_v40 = vmul.f32 0.2, %v252_v37  ;;  %v253_v41 = vadd.f32 %v251_v34, %v246_v39 }
 0x167   :  { %v256_v43 = vmax.f32 %v252_v37, %v254_v40  ;;  %v255_v44 = vmul.f32 0.2, %v253_v41 }
 0x169   :  { %v257_v47 = vmax.f32 %v253_v41, %v255_v44  ;;  %v198_v48 = vpop.permute.xlu1 %197  ;;  %v258_v49 = vadd.f32 %v1701_v42, %v256_v43 }
 0x16a   :  { %v209_v50 = vadd.f32 %v208_v46, %v198_v48 }
 0x16b   :  { %v260_v51 = vsel %vm217_vm3, %v258_v49, -inf  ;;  %v259_v52 = vadd.f32 %v1703_v45, %v257_v47 }
 0x16c   :  { %v211_v53 = vmul.f32 0.2, %v209_v50  ;;  %261 = vmax.xlane.f32.xlu1 %v260_v51 }
 0x16d   :  { %v203_v54 = vpop.permute.xlu1 %202  ;;  %v263_v55 = vsel %vm217_vm3, %v259_v52, -inf }
 0x16e   :  { %v213_v56 = vmax.f32 %v209_v50, %v211_v53  ;;  %v210_v57 = vadd.f32 %v208_v46, %v203_v54  ;;  %264 = vmax.xlane.f32.xlu0 %v263_v55  ;;  %v1280_v50 = vld [vmem:[%s1979_s22] ss:$0 sm:$0xff] }
 0x170   :  { %v212_v58 = vmul.f32 0.2, %v210_v57  ;;  %v215_v59 = vadd.f32 %v1701_v42, %v213_v56 }
 0x172   :  { %v214_v60 = vmax.f32 %v210_v57, %v212_v58  ;;  %v218_v61 = vsel %vm217_vm3, %v215_v59, -inf }
 0x173   :  { %219 = vmax.xlane.f32.xlu0 %v218_v61 }
 0x174   :  { %v216_v62 = vadd.f32 %v1703_v45, %v214_v60 }
 0x176   :  { %v221_v63 = vsel %vm217_vm3, %v216_v62, -inf }
 0x177   :  { %222 = vmax.xlane.f32.xlu0 %v221_v63 }
 0x1f9   :  { %v262_v1 = vpop.xlane.xlu1 %261 }
 0x1fa   :  { %v266_v2 = vsub.f32 %v258_v49, %v262_v1 }
 0x1fb   :  { %v265_v3 = vpop.xlane.xlu0 %264 }
 0x1fc   :  { %v268_v4 = vmul.f32 1.442695, %v266_v2  ;;  %v267_v5 = vsub.f32 %v259_v52, %v265_v3 }
 0x1fe   :  { %1444 = vpow2.f32 %v268_v4  ;;  %v270_v6 = vmul.f32 1.442695, %v267_v5 }
 0x200   :  { %1446 = vpow2.f32 %v270_v6  ;;  %v220_v7 = vpop.xlane.xlu0 %219  ;;  %v403_v6 = vld [vmem:[%s1950_s8] sm:$0xff] }
 0x201   :  { %v224_v9 = vsub.f32 %v215_v59, %v220_v7  ;;  %v404_v7 = vld [vmem:[%s1950_s8 + $0x8] sm:$0xff] }
 0x203   :  { %v226_v10 = vmul.f32 1.442695, %v224_v9  ;;  %v405_v9 = vld [vmem:[%s1950_s8 + $0x10] sm:$0xff] }
 0x204   :  { %v223_v11 = vpop.xlane.xlu0 %222 }
 0x205   :  { %1448 = vpow2.f32 %v226_v10  ;;  %v225_v14 = vsub.f32 %v216_v62, %v223_v11  ;;  %v407_v10 = vpack.c.bf16 %v404_v7, %v403_v6  ;;  %v406_v11 = vld [vmem:[%s1950_s8 + $0x18] sm:$0xff] }
 0x207   :  { %v228_v17 = vmul.f32 1.442695, %v225_v14  ;;  %1358 = vmatpush3.bf16.msra.mxu1 %v407_v10  ;;  %v408_v14 = vpack.c.bf16 %v406_v11, %v405_v9 }
 0x208   :  { %v1445_v18 = vpop.eup %1444  ;;  %1359 = vmatprep.subr.bf16.mxu1 %v1524_v0 }
 0x209   :  { %1450 = vpow2.f32 %v228_v17  ;;  %v272_v19 = vsel %vm217_vm3, %v1445_v18, 0.0  ;;  %v409_v17 = vld [vmem:[%s1951_s9] sm:$0xff] }
 0x20a   :  { %v1447_v20 = vpop.eup %1446  ;;  %273 = vadd.xlane.f32.xlu1 %v272_v19  ;;  %v411_v19 = vld [vmem:[%s1951_s9 + $0x10] sm:$0xff] }
 0x20b   :  { %v275_v21 = vsel %vm217_vm3, %v1447_v20, 0.0  ;;  %1360 = vmatpush3.bf16.msra.mxu1 %v408_v14 }
 0x20c   :  { %276 = vadd.xlane.f32.xlu0 %v275_v21  ;;  %1371 = vmatprep.subr.bf16.mxu1 %v1524_v0  ;;  %v412_v21 = vld [vmem:[%s1951_s9 + $0x18] sm:$0xff] }
 0x20f   :  { %v1449_v22 = vpop.eup %1448 }
 0x210   :  { %v230_v23 = vsel %vm217_vm3, %v1449_v22, 0.0 }
 0x211   :  { %231 = vadd.xlane.f32.xlu1 %v230_v23 }
 0x213   :  { %v1451_v24 = vpop.eup %1450 }
 0x214   :  { %v233_v25 = vsel %vm217_vm3, %v1451_v24, 0.0 }
 0x215   :  { %234 = vadd.xlane.f32.xlu0 %v233_v25 }
 0x297   :  { %v274_v27 = vpop.xlane.xlu1 %273 }
 0x298   :  { %1452 = vrcp.f32 %v274_v27 }
 0x299   :  { %v277_v28 = vpop.xlane.xlu0 %276 }
 0x29a   :  { %1454 = vrcp.f32 %v277_v28 }
 0x29e   :  { %v232_v35 = vpop.xlane.xlu1 %231 }
 0x29f   :  { %1456 = vrcp.f32 %v232_v35 }
 0x2a2   :  { %v1453_v29 = vpop.eup %1452  ;;  %v235_v36 = vpop.xlane.xlu0 %234 }
 0x2a3   :  { %v280_v31 = vmul.f32 %v1453_v29, %v1445_v18  ;;  %1458 = vrcp.f32 %v235_v36  ;;  %v410_v18 = vld [vmem:[%s1951_s9 + $0x8] sm:$0xff] }
 0x2a4   :  { %v1455_v30 = vpop.eup %1454 }
 0x2a5   :  { %v281_v32 = vmul.f32 %v1455_v30, %v1447_v20  ;;  %v413_v20 = vpack.c.bf16 %v410_v18, %v409_v17 }
 0x2a7   :  { %v1422_v34 = vpack.i.bf16 %v281_v32, %v280_v31  ;;  %v1282_v31 = vld [vmem:[%s1952_s6] ss:$0 sm:$0xff] }
 0x2a9   :  { %1423 = vrot.lane.b32.xlu1 %v1422_v34, %s1528_s3  ;;  %v1457_v37 = vpop.eup %1456  ;;  %v1283_v34 = vld [vmem:[%s1953_s7] ss:$0 sm:$0xff] }
 0x2aa   :  { %v238_v41 = vmul.f32 %v1457_v37, %v1449_v22  ;;  %v414_v22 = vpack.c.bf16 %v412_v21, %v411_v19 }
 0x2ad   :  { %v1459_v39 = vpop.eup %1458 }
 0x2ae   :  { %v239_v46 = vmul.f32 %v1459_v39, %v1451_v24 }
 0x2cc   :  { %463 = vxpose.xlu1.c.b16.start [1/2] (short) (narrow) %v413_v20, 16 }
 0x2d0   :  { %464 = vxpose.xlu1.c.b16.end [2/2] (short) (narrow) %v414_v22, 16 }
 0x31b   :  { %v1424_v40 = vpop.permute.xlu1 %1423 }
 0x31c   :  { %v1426_v43 = vunpack.i.h.bf16 %v1424_v40  ;;  %v1425_v44 = vunpack.i.l.bf16 %v1424_v40 }
 0x31e   :  { %v290_v47 = vsel %vm217_vm3, %v238_v41, %v1425_v44  ;;  %v291_v48 = vsel %vm217_vm3, %v239_v46, %v1426_v43 }
 0x31f   :  { %v296_v49 = vpack.c.bf16 %v291_v48, %v290_v47 }
 0x321   :  { %1354 = vmatmul.mubr.msk.bf16.vlgmr.msra.gmra.mrb[4].mxu0 %vm305_vm4, %v296_v49 }
 0x322   :  { %1367 = vmatprep.mubr.msk.bf16.mxu0 %vm1525_vm1, %v1524_v0 }
 0x3f4   :  { %v343_v51 = vpop.f32.mrb[4].mxu0 }
 0x3f5   :  { %v344_v52 = vadd.f32 %v1280_v50, %v343_v51  ;;  %v1355_v53 = vpop.f32.mrb[5].mxu0 }
 0x3f6   :  { %v346_v54 = vpop.f32.mrb[6].mxu0 }
 0x3f7   :  { %v347_v55 = vadd.f32 %v1280_v50, %v346_v54  ;;  %v1356_v56 = vpop.f32.mrb[7].mxu0  ;;  %v350_v57 = vsel %vm305_vm4, %v344_v52, 0.0  ;;  %v471_v54 = vpop.trf.xlu1 }
 0x3f8   :  { %351 = vadd.xlane.f32.xlu0 %v350_v57 }
 0x3f9   :  { %v353_v58 = vsel %vm305_vm4, %v347_v55, 0.0 }
 0x3fc   :  { %354 = vadd.xlane.f32.xlu0 %v353_v58 }
 0x485   :  { %v352_v59 = vpop.xlane.xlu0 %351 }
 0x486   :  { %v357_v60 = vmul.f32 0.03125, %v352_v59 }
 0x488   :  { %v359_v61 = vsub.f32 %v344_v52, %v357_v60 }
 0x489   :  { %v355_v62 = vpop.xlane.xlu0 %354 }
 0x48a   :  { %v358_v63 = vmul.f32 0.03125, %v355_v62  ;;  %v361_v1 = vmul.f32 %v359_v61, %v359_v61 }
 0x48c   :  { %v360_v2 = vsub.f32 %v347_v55, %v358_v63  ;;  %v363_v3 = vsel %vm305_vm4, %v361_v1, 0.0 }
 0x48d   :  { %364 = vadd.xlane.f32.xlu0 %v363_v3 }
 0x48e   :  { %v362_v4 = vmul.f32 %v360_v2, %v360_v2 }
 0x490   :  { %v366_v5 = vsel %vm305_vm4, %v362_v4, 0.0 }
 0x491   :  { %367 = vadd.xlane.f32.xlu0 %v366_v5 }
 0x51a   :  { %v365_v23 = vpop.xlane.xlu0 %364 }
 0x51b   :  { %v369_v24 = vmul.f32 0.03125, %v365_v23 }
 0x51d   :  { %v371_v25 = vadd.f32 1e-05, %v369_v24 }
 0x51e   :  { %v368_v27 = vpop.xlane.xlu0 %367 }
 0x51f   :  { %1460 = vrsqrt.f32 %v371_v25  ;;  %v370_v28 = vmul.f32 0.03125, %v368_v27 }
 0x521   :  { %v372_v29 = vadd.f32 1e-05, %v370_v28 }
 0x523   :  { %1462 = vrsqrt.f32 %v372_v29 }
 0x529   :  { %v1461_v30 = vpop.eup %1460 }
 0x52a   :  { %v375_v32 = vmul.f32 %v1461_v30, %v359_v61 }
 0x52c   :  { %v383_v35 = vmul.f32 %v1282_v31, %v375_v32 }
 0x52d   :  { %v1463_v36 = vpop.eup %1462 }
 0x52e   :  { %v391_v37 = vadd.f32 %v1283_v34, %v383_v35  ;;  %v376_v39 = vmul.f32 %v1463_v36, %v360_v2 }
 0x530   :  { %v384_v40 = vmul.f32 %v1282_v31, %v376_v39  ;;  %v395_v41 = vmul.f32 1.442695, %v391_v37  ;;  %vm393_vm5 = vcmp.gt.f32.partialorder %v391_v37, 0.0 }
 0x532   :  { %v392_v43 = vadd.f32 %v1283_v34, %v384_v40  ;;  %1464 = vpow2.f32 %v395_v41 }
 0x534   :  { %v397_v44 = vmul.f32 1.442695, %v392_v43  ;;  %vm394_vm6 = vcmp.gt.f32.partialorder %v392_v43, 0.0 }
 0x536   :  { %1466 = vpow2.f32 %v397_v44 }
 0x53c   :  { %v1465_v46 = vpop.eup %1464 }
 0x53d   :  { %v1284_v47 = vadd.f32 -1.0, %v1465_v46 }
 0x53f   :  { %v401_v50 = vsel %vm393_vm5, %v391_v37, %v1284_v47 }
 0x540   :  { %v1467_v48 = vpop.eup %1466 }
 0x541   :  { %v1285_v49 = vadd.f32 -1.0, %v1467_v48 }
 0x543   :  { %v402_v51 = vsel %vm394_vm6, %v392_v43, %v1285_v49 }
 0x544   :  { %v418_v52 = vpack.c.bf16 %v402_v51, %v401_v50 }
 0x546   :  { %1362 = vmatmul.mubr.msk.bf16.vlgmr.msra.gmra.mrb[4].mxu1 %vm305_vm4, %v418_v52  ;;  %v420_v53 = vsel %vm305_vm4, %v418_v52, 0 }
 0x547   :  { %1366 = vmatpush3.bf16.xpose.msra.mxu0 %v420_v53  ;;  %1375 = vmatprep.mubr.msk.bf16.mxu1 %vm1525_vm1, %v1524_v0 }
 0x548   :  { %1379 = vmatprep.subr.bf16.mxu0 %v1524_v0 }
 0x54e   :  { %1368 = vmatmul.mubr.msk.bf16.vlgmr.msra.gmra.mrb[8].mxu0 %vm305_vm4, %v471_v54 }
 0x54f   :  { %1383 = vmatprep.mubr.msk.bf16.mxu0 %vm1525_vm1, %v1524_v0 }
 0x619   :  { %v456_v55 = vpop.f32.mrb[4].mxu1 }
 0x61a   :  { %567 = vperm.xlu0 %1419, %v456_v55   ;;  %v1363_v56 = vpop.f32.mrb[5].mxu1  ;;  %v618_v58 = vmul.f32 %v456_v55, %v1669_v12  ;;  %v620_v59 = vmul.f32 %v456_v55, %v1674_v13 }
 0x61b   :  { %v459_v57 = vpop.f32.mrb[6].mxu1 }
 0x61c   :  { %v619_v60 = vmul.f32 %v459_v57, %v1679_v15  ;;  %v621_v61 = vmul.f32 %v459_v57, %v1684_v16  ;;  %v1364_v62 = vpop.f32.mrb[7].mxu1 }
 0x61e   :  { %571 = vperm.xlu0 %1419, %v459_v57   ;;  %v623_v63 = vpack.c.bf16 %v619_v60, %v618_v58  ;;  %v624_v1 = vpack.c.bf16 %v621_v61, %v620_v59 }
 0x620   :  { %1372 = vmatpush3.bf16.msra.mxu1 %v623_v63 }
 0x621   :  { %1373 = vmatprep.subr.bf16.mxu1 %v1524_v0  ;;  %v516_v2 = vpop.f32.mrb[8].mxu0 }
 0x622   :  { %1427 = vset.pattern.permute.xlu0 %v1527_v26  ;;  %v1369_v3 = vpop.f32.mrb[9].mxu0  ;;  %v577_v6 = vrot.slane %v516_v2, %v1693_v33  ;;  %v535_v20 = vrot.slane %v516_v2, %v1699_v38 }
 0x623   :  { %524 = vperm.xlu0 %1427, %v456_v55   ;;  %v519_v4 = vpop.f32.mrb[10].mxu0 }
 0x624   :  { %1374 = vmatpush3.bf16.msra.mxu1 %v624_v1  ;;  %v1370_v5 = vpop.f32.mrb[11].mxu0 }
 0x625   :  { %1387 = vmatprep.subr.bf16.mxu1 %v1524_v0 }
 0x627   :  { %529 = vperm.xlu0 %1427, %v459_v57  }
 0x62b   :  { %1433 = vset.pattern.permute.xlu0 %v1526_v8 }
 0x699   :  { %v568_v7 = vpop.permute.xlu0 %567 }
 0x69a   :  { %v578_v9 = vadd.f32 %v577_v6, %v568_v7 }
 0x69c   :  { %v580_v10 = vmul.f32 0.2, %v578_v9 }
 0x69d   :  { %v572_v11 = vpop.permute.xlu0 %571 }
 0x69e   :  { %v582_v14 = vmax.f32 %v578_v9, %v580_v10  ;;  %v579_v17 = vadd.f32 %v577_v6, %v572_v11 }
 0x6a0   :  { %v581_v18 = vmul.f32 0.2, %v579_v17  ;;  %v584_v19 = vadd.f32 %v1701_v42, %v582_v14 }
 0x6a2   :  { %v583_v21 = vmax.f32 %v579_v17, %v581_v18  ;;  %v525_v22 = vpop.permute.xlu0 %524  ;;  %v586_v23 = vsel %vm217_vm3, %v584_v19, -inf }
 0x6a3   :  { %v536_v24 = vadd.f32 %v535_v20, %v525_v22  ;;  %587 = vmax.xlane.f32.xlu1 %v586_v23  ;;  %v1288_v23 = vld [vmem:[%s1954_s10] ss:$0 sm:$0xff] }
 0x6a4   :  { %v585_v25 = vadd.f32 %v1703_v45, %v583_v21 }
 0x6a5   :  { %v538_v27 = vmul.f32 0.2, %v536_v24 }
 0x6a6   :  { %v530_v28 = vpop.permute.xlu0 %529  ;;  %v589_v29 = vsel %vm217_vm3, %v585_v25, -inf }
 0x6a7   :  { %v540_v30 = vmax.f32 %v536_v24, %v538_v27  ;;  %v537_v31 = vadd.f32 %v535_v20, %v530_v28  ;;  %590 = vmax.xlane.f32.xlu0 %v589_v29 }
 0x6a9   :  { %v539_v32 = vmul.f32 0.2, %v537_v31  ;;  %v542_v34 = vadd.f32 %v1701_v42, %v540_v30 }
 0x6ab   :  { %v541_v35 = vmax.f32 %v537_v31, %v539_v32  ;;  %v544_v36 = vsel %vm217_vm3, %v542_v34, -inf }
 0x6ac   :  { %545 = vmax.xlane.f32.xlu1 %v544_v36 }
 0x6ad   :  { %v543_v37 = vadd.f32 %v1703_v45, %v541_v35 }
 0x6af   :  { %v547_v39 = vsel %vm217_vm3, %v543_v37, -inf }
 0x6b0   :  { %548 = vmax.xlane.f32.xlu1 %v547_v39 }
 0x730   :  { %v588_v40 = vpop.xlane.xlu1 %587 }
 0x731   :  { %v592_v41 = vsub.f32 %v584_v19, %v588_v40 }
 0x733   :  { %v594_v43 = vmul.f32 1.442695, %v592_v41 }
 0x734   :  { %v591_v44 = vpop.xlane.xlu0 %590 }
 0x735   :  { %1468 = vpow2.f32 %v594_v43  ;;  %v593_v46 = vsub.f32 %v585_v25, %v591_v44 }
 0x737   :  { %v596_v47 = vmul.f32 1.442695, %v593_v46 }
 0x739   :  { %1470 = vpow2.f32 %v596_v47  ;;  %v546_v48 = vpop.xlane.xlu1 %545  ;;  %v727_v47 = vld [vmem:[%s1955_s13] sm:$0xff] }
 0x73a   :  { %v550_v49 = vsub.f32 %v542_v34, %v546_v48  ;;  %v728_v48 = vld [vmem:[%s1955_s13 + $0x8] sm:$0xff] }
 0x73c   :  { %v552_v50 = vmul.f32 1.442695, %v550_v49  ;;  %v729_v49 = vld [vmem:[%s1955_s13 + $0x10] sm:$0xff] }
 0x73d   :  { %v549_v51 = vpop.xlane.xlu1 %548 }
 0x73e   :  { %1472 = vpow2.f32 %v552_v50  ;;  %v551_v52 = vsub.f32 %v543_v37, %v549_v51  ;;  %v731_v50 = vpack.c.bf16 %v728_v48, %v727_v47  ;;  %v730_v51 = vld [vmem:[%s1955_s13 + $0x18] sm:$0xff] }
 0x73f   :  { %v1469_v53 = vpop.eup %1468 }
 0x740   :  { %v554_v54 = vmul.f32 1.442695, %v551_v52  ;;  %v598_v55 = vsel %vm217_vm3, %v1469_v53, 0.0  ;;  %1380 = vmatpush3.bf16.msra.mxu0 %v731_v50  ;;  %v732_v52 = vpack.c.bf16 %v730_v51, %v729_v49 }
 0x741   :  { %599 = vadd.xlane.f32.xlu1 %v598_v55  ;;  %1381 = vmatprep.subr.bf16.mxu0 %v1524_v0  ;;  %v735_v55 = vld [vmem:[%s1956_s14 + $0x10] sm:$0xff] }
 0x742   :  { %1474 = vpow2.f32 %v554_v54  ;;  %v734_v54 = vld [vmem:[%s1956_s14 + $0x8] sm:$0xff] }
 0x743   :  { %v1471_v56 = vpop.eup %1470 }
 0x744   :  { %v601_v57 = vsel %vm217_vm3, %v1471_v56, 0.0  ;;  %1382 = vmatpush3.bf16.msra.mxu0 %v732_v52 }
 0x745   :  { %602 = vadd.xlane.f32.xlu1 %v601_v57  ;;  %1393 = vmatprep.subr.bf16.mxu0 %v1524_v0  ;;  %v736_v57 = vld [vmem:[%s1956_s14 + $0x18] sm:$0xff] }
 0x748   :  { %v1473_v58 = vpop.eup %1472 }
 0x749   :  { %v556_v59 = vsel %vm217_vm3, %v1473_v58, 0.0 }
 0x74a   :  { %557 = vadd.xlane.f32.xlu1 %v556_v59 }
 0x74c   :  { %v1475_v60 = vpop.eup %1474 }
 0x74d   :  { %v559_v61 = vsel %vm217_vm3, %v1475_v60, 0.0 }
 0x74e   :  { %560 = vadd.xlane.f32.xlu0 %v559_v61 }
 0x7ce   :  { %v600_v62 = vpop.xlane.xlu1 %599 }
 0x7cf   :  { %1476 = vrcp.f32 %v600_v62 }
 0x7d2   :  { %v603_v63 = vpop.xlane.xlu1 %602 }
 0x7d3   :  { %1478 = vrcp.f32 %v603_v63 }
 0x7d7   :  { %v558_v6 = vpop.xlane.xlu1 %557 }
 0x7d8   :  { %1480 = vrcp.f32 %v558_v6 }
 0x7d9   :  { %v1477_v1 = vpop.eup %1476 }
 0x7da   :  { %v606_v3 = vmul.f32 %v1477_v1, %v1469_v53  ;;  %v733_v53 = vld [vmem:[%s1956_s14] sm:$0xff] }
 0x7db   :  { %v561_v7 = vpop.xlane.xlu0 %560 }
 0x7dc   :  { %1482 = vrcp.f32 %v561_v7 }
 0x7dd   :  { %v1479_v2 = vpop.eup %1478 }
 0x7de   :  { %v607_v4 = vmul.f32 %v1479_v2, %v1471_v56  ;;  %v737_v56 = vpack.c.bf16 %v734_v54, %v733_v53 }
 0x7e0   :  { %v1428_v5 = vpack.i.bf16 %v607_v4, %v606_v3  ;;  %v1290_v3 = vld [vmem:[%s1957_s11] ss:$0 sm:$0xff] }
 0x7e2   :  { %1429 = vrot.lane.b32.xlu1 %v1428_v5, %s1528_s3  ;;  %v1481_v9 = vpop.eup %1480  ;;  %v1291_v5 = vld [vmem:[%s1958_s12] ss:$0 sm:$0xff] }
 0x7e3   :  { %v564_v14 = vmul.f32 %v1481_v9, %v1473_v58  ;;  %v738_v58 = vpack.c.bf16 %v736_v57, %v735_v55 }
 0x7e6   :  { %v1483_v10 = vpop.eup %1482 }
 0x7e7   :  { %v565_v19 = vmul.f32 %v1483_v10, %v1475_v60 }
 0x805   :  { %787 = vxpose.xlu1.c.b16.start [1/2] (short) (narrow) %v737_v56, 16 }
 0x809   :  { %788 = vxpose.xlu1.c.b16.end [2/2] (short) (narrow) %v738_v58, 16 }
 0x80d   :  { %1434 = vset.pattern.permute.xlu1 %v1526_v8 }
 0x854   :  { %v1430_v11 = vpop.permute.xlu1 %1429 }
 0x855   :  { %v1432_v17 = vunpack.i.h.bf16 %v1430_v11  ;;  %v1431_v18 = vunpack.i.l.bf16 %v1430_v11 }
 0x857   :  { %v616_v20 = vsel %vm217_vm3, %v564_v14, %v1431_v18  ;;  %v617_v21 = vsel %vm217_vm3, %v565_v19, %v1432_v17 }
 0x858   :  { %v622_v22 = vpack.c.bf16 %v617_v21, %v616_v20 }
 0x85a   :  { %1376 = vmatmul.mubr.msk.bf16.vlgmr.msra.gmra.mrb[8].mxu1 %vm305_vm4, %v622_v22 }
 0x85b   :  { %1389 = vmatprep.mubr.msk.bf16.mxu1 %vm1525_vm1, %v1524_v0 }
 0x92d   :  { %v668_v24 = vpop.f32.mrb[8].mxu1 }
 0x92e   :  { %v669_v25 = vadd.f32 %v1288_v23, %v668_v24  ;;  %v1377_v27 = vpop.f32.mrb[9].mxu1 }
 0x92f   :  { %v671_v28 = vpop.f32.mrb[10].mxu1  ;;  %v795_v27 = vpop.trf.xlu1 }
 0x930   :  { %v672_v29 = vadd.f32 %v1288_v23, %v671_v28  ;;  %v1378_v30 = vpop.f32.mrb[11].mxu1  ;;  %v675_v31 = vsel %vm305_vm4, %v669_v25, 0.0 }
 0x931   :  { %676 = vadd.xlane.f32.xlu0 %v675_v31 }
 0x932   :  { %v678_v32 = vsel %vm305_vm4, %v672_v29, 0.0 }
 0x935   :  { %679 = vadd.xlane.f32.xlu0 %v678_v32 }
 0x9be   :  { %v677_v34 = vpop.xlane.xlu0 %676 }
 0x9bf   :  { %v681_v35 = vmul.f32 0.03125, %v677_v34 }
 0x9c1   :  { %v683_v36 = vsub.f32 %v669_v25, %v681_v35 }
 0x9c2   :  { %v680_v37 = vpop.xlane.xlu0 %679 }
 0x9c3   :  { %v682_v39 = vmul.f32 0.03125, %v680_v37  ;;  %v685_v40 = vmul.f32 %v683_v36, %v683_v36 }
 0x9c5   :  { %v684_v41 = vsub.f32 %v672_v29, %v682_v39  ;;  %v687_v43 = vsel %vm305_vm4, %v685_v40, 0.0 }
 0x9c6   :  { %688 = vadd.xlane.f32.xlu0 %v687_v43 }
 0x9c7   :  { %v686_v44 = vmul.f32 %v684_v41, %v684_v41 }
 0x9c9   :  { %v690_v46 = vsel %vm305_vm4, %v686_v44, 0.0 }
 0x9ca   :  { %691 = vadd.xlane.f32.xlu0 %v690_v46 }
 0xa53   :  { %v689_v59 = vpop.xlane.xlu0 %688 }
 0xa54   :  { %v693_v60 = vmul.f32 0.03125, %v689_v59 }
 0xa56   :  { %v695_v61 = vadd.f32 1e-05, %v693_v60 }
 0xa57   :  { %v692_v62 = vpop.xlane.xlu0 %691 }
 0xa58   :  { %1484 = vrsqrt.f32 %v695_v61  ;;  %v694_v63 = vmul.f32 0.03125, %v692_v62 }
 0xa5a   :  { %v696_v1 = vadd.f32 1e-05, %v694_v63 }
 0xa5c   :  { %1486 = vrsqrt.f32 %v696_v1 }
 0xa62   :  { %v1485_v2 = vpop.eup %1484 }
 0xa63   :  { %v699_v4 = vmul.f32 %v1485_v2, %v683_v36 }
 0xa65   :  { %v707_v6 = vmul.f32 %v1290_v3, %v699_v4 }
 0xa66   :  { %v1487_v8 = vpop.eup %1486 }
 0xa67   :  { %v715_v7 = vadd.f32 %v1291_v5, %v707_v6  ;;  %v700_v9 = vmul.f32 %v1487_v8, %v684_v41 }
 0xa69   :  { %v708_v10 = vmul.f32 %v1290_v3, %v700_v9  ;;  %v719_v11 = vmul.f32 1.442695, %v715_v7  ;;  %vm717_vm7 = vcmp.gt.f32.partialorder %v715_v7, 0.0 }
 0xa6b   :  { %v716_v14 = vadd.f32 %v1291_v5, %v708_v10  ;;  %1488 = vpow2.f32 %v719_v11 }
 0xa6d   :  { %v721_v17 = vmul.f32 1.442695, %v716_v14  ;;  %vm718_vm8 = vcmp.gt.f32.partialorder %v716_v14, 0.0 }
 0xa6f   :  { %1490 = vpow2.f32 %v721_v17 }
 0xa75   :  { %v1489_v18 = vpop.eup %1488 }
 0xa76   :  { %v1292_v19 = vadd.f32 -1.0, %v1489_v18 }
 0xa78   :  { %v725_v22 = vsel %vm717_vm7, %v715_v7, %v1292_v19 }
 0xa79   :  { %v1491_v20 = vpop.eup %1490 }
 0xa7a   :  { %v1293_v21 = vadd.f32 -1.0, %v1491_v20 }
 0xa7c   :  { %v726_v23 = vsel %vm718_vm8, %v716_v14, %v1293_v21 }
 0xa7d   :  { %v742_v24 = vpack.c.bf16 %v726_v23, %v725_v22 }
 0xa7f   :  { %1384 = vmatmul.mubr.msk.bf16.vlgmr.msra.gmra.mrb[12].mxu0 %vm305_vm4, %v742_v24  ;;  %v744_v25 = vsel %vm305_vm4, %v742_v24, 0 }
 0xa80   :  { %1388 = vmatpush3.bf16.xpose.msra.mxu1 %v744_v25  ;;  %1397 = vmatprep.mubr.msk.bf16.mxu0 %vm1525_vm1, %v1524_v0 }
 0xa87   :  { %1390 = vmatmul.mubr.msk.bf16.vlgmr.msra.gmra.mrb[12].mxu1 %vm305_vm4, %v795_v27 }
 0xb52   :  { %v780_v28 = vpop.f32.mrb[12].mxu0 }
 0xb53   :  { %891 = vperm.xlu0 %1433, %v780_v28   ;;  %v1385_v29 = vpop.f32.mrb[13].mxu0  ;;  %v942_v31 = vmul.f32 %v780_v28, %v1669_v12  ;;  %v944_v32 = vmul.f32 %v780_v28, %v1674_v13 }
 0xb54   :  { %v783_v30 = vpop.f32.mrb[14].mxu0 }
 0xb55   :  { %v943_v34 = vmul.f32 %v783_v30, %v1679_v15  ;;  %v945_v35 = vmul.f32 %v783_v30, %v1684_v16  ;;  %895 = vperm.xlu1 %1434, %v783_v30   ;;  %v1386_v36 = vpop.f32.mrb[15].mxu0 }
 0xb57   :  { %1436 = vset.pattern.permute.xlu0 %v1527_v26  ;;  %v947_v37 = vpack.c.bf16 %v943_v34, %v942_v31  ;;  %v948_v39 = vpack.c.bf16 %v945_v35, %v944_v32 }
 0xb58   :  { %853 = vperm.xlu0 %1436, %v783_v30  }
 0xb59   :  { %1435 = vset.pattern.permute.xlu1 %v1527_v26  ;;  %1394 = vmatpush3.bf16.msra.mxu0 %v947_v37 }
 0xb5a   :  { %848 = vperm.xlu1 %1435, %v780_v28   ;;  %1395 = vmatprep.subr.bf16.mxu0 %v1524_v0  ;;  %v840_v12 = vpop.f32.mrb[12].mxu1 }
 0xb5b   :  { %v1391_v40 = vpop.f32.mrb[13].mxu1  ;;  %v901_v16 = vrot.slane %v840_v12, %v1693_v33  ;;  %v859_v26 = vrot.slane %v840_v12, %v1699_v38 }
 0xb5c   :  { %v843_v13 = vpop.f32.mrb[14].mxu1 }
 0xb5d   :  { %1396 = vmatpush3.bf16.msra.mxu0 %v948_v39  ;;  %v1392_v15 = vpop.f32.mrb[15].mxu1 }
 0xb5e   :  { %1401 = vmatprep.subr.bf16.mxu0 %v1524_v0 }
 0xbd2   :  { %v892_v41 = vpop.permute.xlu0 %891 }
 0xbd3   :  { %v902_v43 = vadd.f32 %v901_v16, %v892_v41 }
 0xbd4   :  { %v896_v44 = vpop.permute.xlu1 %895 }
 0xbd5   :  { %v904_v46 = vmul.f32 0.2, %v902_v43  ;;  %v903_v47 = vadd.f32 %v901_v16, %v896_v44 }
 0xbd7   :  { %v906_v48 = vmax.f32 %v902_v43, %v904_v46  ;;  %v905_v49 = vmul.f32 0.2, %v903_v47  ;;  %v854_v50 = vpop.permute.xlu0 %853 }
 0xbd8   :  { %v861_v51 = vadd.f32 %v859_v26, %v854_v50 }
 0xbd9   :  { %v907_v52 = vmax.f32 %v903_v47, %v905_v49  ;;  %v849_v53 = vpop.permute.xlu1 %848  ;;  %v908_v54 = vadd.f32 %v1701_v42, %v906_v48  ;;  %v1296_v47 = vld [vmem:[%s1959_s15] ss:$0 sm:$0xff] }
 0xbda   :  { %v863_v55 = vmul.f32 0.2, %v861_v51  ;;  %v860_v56 = vadd.f32 %v859_v26, %v849_v53 }
 0xbdb   :  { %v910_v57 = vsel %vm217_vm3, %v908_v54, -inf  ;;  %v909_v33 = vadd.f32 %v1703_v45, %v907_v52 }
 0xbdc   :  { %v865_v58 = vmax.f32 %v861_v51, %v863_v55  ;;  %v862_v59 = vmul.f32 0.2, %v860_v56  ;;  %911 = vmax.xlane.f32.xlu1 %v910_v57 }
 0xbdd   :  { %v913_v60 = vsel %vm217_vm3, %v909_v33, -inf }
 0xbde   :  { %v864_v61 = vmax.f32 %v860_v56, %v862_v59  ;;  %914 = vmax.xlane.f32.xlu0 %v913_v60  ;;  %v867_v62 = vadd.f32 %v1703_v45, %v865_v58 }
 0xbe0   :  { %v871_v63 = vsel %vm217_vm3, %v867_v62, -inf  ;;  %v866_v1 = vadd.f32 %v1701_v42, %v864_v61 }
 0xbe2   :  { %872 = vmax.xlane.f32.xlu0 %v871_v63  ;;  %v868_v2 = vsel %vm217_vm3, %v866_v1, -inf }
 0xbe3   :  { %869 = vmax.xlane.f32.xlu1 %v868_v2  ;;  %v1054_v2 = vld [vmem:[%s1960_s18 + $0x18] sm:$0xff] }
 0xc69   :  { %v912_v3 = vpop.xlane.xlu1 %911 }
 0xc6a   :  { %v916_v4 = vsub.f32 %v908_v54, %v912_v3  ;;  %v1051_v3 = vld [vmem:[%s1960_s18] sm:$0xff] }
 0xc6b   :  { %v915_v5 = vpop.xlane.xlu0 %914 }
 0xc6c   :  { %v918_v6 = vmul.f32 1.442695, %v916_v4  ;;  %v917_v8 = vsub.f32 %v909_v33, %v915_v5  ;;  %v1529_v4 = vmov 0  }
 0xc6d   :  { %1106 = vmatprep.mubr.bf16.mxu1 %v1529_v4  ;;  %1442 = vset.pattern.permute.xlu0 %v1529_v4 }
 0xc6e   :  { %1492 = vpow2.f32 %v918_v6  ;;  %v920_v7 = vmul.f32 1.442695, %v917_v8  ;;  %v1053_v6 = vld [vmem:[%s1960_s18 + $0x10] sm:$0xff]  ;;  %v1056_v8 = vld [vmem:[%s1960_s18 + $0x28] sm:$0xff] }
 0xc6f   :  { %v873_v9 = vpop.xlane.xlu0 %872 }
 0xc70   :  { %1494 = vpow2.f32 %v920_v7  ;;  %v875_v10 = vsub.f32 %v867_v62, %v873_v9  ;;  %v870_v11 = vpop.xlane.xlu1 %869  ;;  %v1058_v7 = vld [vmem:[%s1960_s18 + $0x38] sm:$0xff]  ;;  %v1059_v9 = vpack.c.bf16 %v1053_v6, %v1051_v3 }
 0xc71   :  { %v874_v14 = vsub.f32 %v866_v1, %v870_v11  ;;  %v1052_v1 = vld [vmem:[%s1960_s18 + $0x8] sm:$0xff]  ;;  %v1055_v11 = vld [vmem:[%s1960_s18 + $0x20] sm:$0xff] }
 0xc72   :  { %v878_v17 = vmul.f32 1.442695, %v875_v10  ;;  %v1060_v5 = vpack.c.bf16 %v1054_v2, %v1052_v1  ;;  %v1062_v10 = vpack.c.bf16 %v1058_v7, %v1056_v8 }
 0xc73   :  { %v876_v18 = vmul.f32 1.442695, %v874_v14  ;;  %v1057_v14 = vld [vmem:[%s1960_s18 + $0x30] sm:$0xff] }
 0xc74   :  { %1496 = vpow2.f32 %v878_v17  ;;  %1074 = vmatprep.subr.bf16.mxu1 %v1060_v5  ;;  %v1061_v17 = vpack.c.bf16 %v1057_v14, %v1055_v11 }
 0xc75   :  { %1498 = vpow2.f32 %v876_v18  ;;  %1075 = vmatpush1.bf16.msra.mxu1 %v1059_v9  ;;  %v1063_v18 = vld [vmem:[%s1961_s19] sm:$0xff] }
 0xc76   :  { %1076 = vmatprep.subr.bf16.mxu1 %v1062_v10 }
 0xc78   :  { %v1493_v19 = vpop.eup %1492 }
 0xc79   :  { %v922_v20 = vsel %vm217_vm3, %v1493_v19, 0.0  ;;  %1077 = vmatpush1.bf16.msra.mxu1 %v1061_v17 }
 0xc7a   :  { %v1495_v21 = vpop.eup %1494  ;;  %923 = vadd.xlane.f32.xlu1 %v922_v20  ;;  %1407 = vmatprep.subr.bf16.mxu1 %v1524_v0  ;;  %v1065_v20 = vld [vmem:[%s1961_s19 + $0x10] sm:$0xff] }
 0xc7b   :  { %v925_v22 = vsel %vm217_vm3, %v1495_v21, 0.0 }
 0xc7c   :  { %926 = vadd.xlane.f32.xlu0 %v925_v22  ;;  %v1066_v22 = vld [vmem:[%s1961_s19 + $0x18] sm:$0xff] }
 0xc7e   :  { %v1497_v23 = vpop.eup %1496 }
 0xc7f   :  { %v1499_v24 = vpop.eup %1498  ;;  %v883_v25 = vsel %vm217_vm3, %v1497_v23, 0.0 }
 0xc80   :  { %884 = vadd.xlane.f32.xlu0 %v883_v25  ;;  %v880_v27 = vsel %vm217_vm3, %v1499_v24, 0.0 }
 0xc81   :  { %881 = vadd.xlane.f32.xlu1 %v880_v27 }
 0xd07   :  { %v924_v28 = vpop.xlane.xlu1 %923 }
 0xd08   :  { %1500 = vrcp.f32 %v924_v28 }
 0xd09   :  { %v927_v29 = vpop.xlane.xlu0 %926 }
 0xd0a   :  { %1502 = vrcp.f32 %v927_v29 }
 0xd0d   :  { %v885_v36 = vpop.xlane.xlu0 %884 }
 0xd0e   :  { %v882_v37 = vpop.xlane.xlu1 %881  ;;  %1504 = vrcp.f32 %v885_v36 }
 0xd0f   :  { %1506 = vrcp.f32 %v882_v37 }
 0xd12   :  { %v1501_v30 = vpop.eup %1500 }
 0xd13   :  { %v930_v32 = vmul.f32 %v1501_v30, %v1493_v19  ;;  %v1064_v19 = vld [vmem:[%s1961_s19 + $0x8] sm:$0xff] }
 0xd14   :  { %v1503_v31 = vpop.eup %1502 }
 0xd15   :  { %v931_v34 = vmul.f32 %v1503_v31, %v1495_v21  ;;  %v1067_v21 = vpack.c.bf16 %v1064_v19, %v1063_v18 }
 0xd17   :  { %v1437_v35 = vpack.i.bf16 %v931_v34, %v930_v32  ;;  %v1298_v32 = vld [vmem:[%s1962_s16] ss:$0 sm:$0xff] }
 0xd18   :  { %v1505_v39 = vpop.eup %1504 }
 0xd19   :  { %1438 = vrot.lane.b32.xlu1 %v1437_v35, %s1528_s3  ;;  %v1507_v12 = vpop.eup %1506  ;;  %v889_v15 = vmul.f32 %v1505_v39, %v1497_v23  ;;  %v1068_v23 = vpack.c.bf16 %v1066_v22, %v1065_v20  ;;  %v1299_v35 = vld [vmem:[%s1963_s17] ss:$0 sm:$0xff] }
 0xd1a   :  { %v888_v13 = vmul.f32 %v1507_v12, %v1499_v24 }
 0xd3c   :  { %1117 = vxpose.xlu1.c.b16.start [1/2] (short) (narrow) %v1067_v21, 16 }
 0xd40   :  { %1118 = vxpose.xlu1.c.b16.end [2/2] (short) (narrow) %v1068_v23, 16 }
 0xd44   :  { %1443 = vset.pattern.permute.xlu1 %v1529_v4 }
 0xd8b   :  { %v1439_v40 = vpop.permute.xlu1 %1438 }
 0xd8c   :  { %v1441_v16 = vunpack.i.h.bf16 %v1439_v40  ;;  %v1440_v41 = vunpack.i.l.bf16 %v1439_v40 }
 0xd8e   :  { %v941_v43 = vsel %vm217_vm3, %v889_v15, %v1441_v16  ;;  %v940_v44 = vsel %vm217_vm3, %v888_v13, %v1440_v41 }
 0xd8f   :  { %v946_v46 = vpack.c.bf16 %v941_v43, %v940_v44 }
 0xd91   :  { %1398 = vmatmul.mubr.msk.bf16.vlgmr.msra.gmra.mrb[16].mxu0 %vm305_vm4, %v946_v46 }
 0xd92   :  { %1403 = vmatprep.mubr.msk.bf16.mxu0 %vm1525_vm1, %v1524_v0 }
 0xe64   :  { %v992_v26 = vpop.f32.mrb[16].mxu0 }
 0xe65   :  { %v993_v48 = vadd.f32 %v1296_v47, %v992_v26  ;;  %v1399_v49 = vpop.f32.mrb[17].mxu0 }
 0xe66   :  { %v995_v50 = vpop.f32.mrb[18].mxu0 }
 0xe67   :  { %v996_v51 = vadd.f32 %v1296_v47, %v995_v50  ;;  %v1400_v52 = vpop.f32.mrb[19].mxu0  ;;  %v999_v53 = vsel %vm305_vm4, %v993_v48, 0.0  ;;  %v1125_v50 = vpop.trf.xlu1 }
 0xe68   :  { %1000 = vadd.xlane.f32.xlu0 %v999_v53 }
 0xe69   :  { %v1002_v54 = vsel %vm305_vm4, %v996_v51, 0.0 }
 0xe6c   :  { %1003 = vadd.xlane.f32.xlu0 %v1002_v54 }
 0xef5   :  { %v1001_v55 = vpop.xlane.xlu0 %1000 }
 0xef6   :  { %v1005_v56 = vmul.f32 0.03125, %v1001_v55 }
 0xef8   :  { %v1007_v57 = vsub.f32 %v993_v48, %v1005_v56 }
 0xef9   :  { %v1004_v33 = vpop.xlane.xlu0 %1003 }
 0xefa   :  { %v1006_v58 = vmul.f32 0.03125, %v1004_v33  ;;  %v1009_v59 = vmul.f32 %v1007_v57, %v1007_v57 }
 0xefc   :  { %v1008_v60 = vsub.f32 %v996_v51, %v1006_v58  ;;  %v1011_v61 = vsel %vm305_vm4, %v1009_v59, 0.0 }
 0xefd   :  { %1012 = vadd.xlane.f32.xlu0 %v1011_v61 }
 0xefe   :  { %v1010_v62 = vmul.f32 %v1008_v60, %v1008_v60 }
 0xf00   :  { %v1014_v63 = vsel %vm305_vm4, %v1010_v62, 0.0 }
 0xf01   :  { %1015 = vadd.xlane.f32.xlu0 %v1014_v63 }
 0xf8a   :  { %v1013_v24 = vpop.xlane.xlu0 %1012 }
 0xf8b   :  { %v1017_v25 = vmul.f32 0.03125, %v1013_v24 }
 0xf8d   :  { %v1019_v27 = vadd.f32 1e-05, %v1017_v25 }
 0xf8e   :  { %v1016_v28 = vpop.xlane.xlu0 %1015 }
 0xf8f   :  { %1508 = vrsqrt.f32 %v1019_v27  ;;  %v1018_v29 = vmul.f32 0.03125, %v1016_v28  ;;  %v1304_v27 = vld [vmem:[%s1964_s20] ss:$0 sm:$0xff] }
 0xf91   :  { %v1020_v30 = vadd.f32 1e-05, %v1018_v29 }
 0xf93   :  { %1510 = vrsqrt.f32 %v1020_v30 }
 0xf99   :  { %v1509_v31 = vpop.eup %1508 }
 0xf9a   :  { %v1023_v34 = vmul.f32 %v1509_v31, %v1007_v57 }
 0xf9c   :  { %v1031_v36 = vmul.f32 %v1298_v32, %v1023_v34 }
 0xf9d   :  { %v1511_v37 = vpop.eup %1510 }
 0xf9e   :  { %v1039_v39 = vadd.f32 %v1299_v35, %v1031_v36  ;;  %v1024_v12 = vmul.f32 %v1511_v37, %v1008_v60 }
 0xfa0   :  { %v1032_v40 = vmul.f32 %v1298_v32, %v1024_v12  ;;  %v1043_v13 = vmul.f32 1.442695, %v1039_v39  ;;  %vm1041_vm9 = vcmp.gt.f32.partialorder %v1039_v39, 0.0 }
 0xfa2   :  { %v1040_v15 = vadd.f32 %v1299_v35, %v1032_v40  ;;  %1512 = vpow2.f32 %v1043_v13 }
 0xfa4   :  { %v1045_v16 = vmul.f32 1.442695, %v1040_v15  ;;  %vm1042_vm10 = vcmp.gt.f32.partialorder %v1040_v15, 0.0 }
 0xfa6   :  { %1514 = vpow2.f32 %v1045_v16 }
 0xfac   :  { %v1513_v41 = vpop.eup %1512 }
 0xfad   :  { %v1300_v43 = vadd.f32 -1.0, %v1513_v41 }
 0xfaf   :  { %v1049_v47 = vsel %vm1041_vm9, %v1039_v39, %v1300_v43 }
 0xfb0   :  { %v1515_v44 = vpop.eup %1514 }
 0xfb1   :  { %v1301_v46 = vadd.f32 -1.0, %v1515_v44 }
 0xfb3   :  { %v1050_v26 = vsel %vm1042_vm10, %v1040_v15, %v1301_v46 }
 0xfb4   :  { %v1070_v48 = vpack.c.bf16 %v1050_v26, %v1049_v47 }
 0xfb6   :  { %1302 = vmatmul.mubr.msk.bf16.vlgmr.msra.gmra.mrb[16].mxu1 %vm305_vm4, %v1070_v48  ;;  %v1072_v49 = vsel %vm305_vm4, %v1070_v48, 0 }
 0xfb7   :  { %1402 = vmatpush3.bf16.xpose.msra.mxu0 %v1072_v49  ;;  %1409 = vmatprep.mubr.msk.bf16.mxu1 %vm1525_vm1, %v1524_v0 }
 0xfbe   :  { %1404 = vmatmul.mubr.msk.bf16.vlgmr.msra.gmra.mrb[20].mxu0 %vm305_vm4, %v1125_v50 }
0x1089   :  { %v1108_v51 = vpop.f32.mrb[16].mxu1 }
0x108a   :  { %v1110_v52 = vpop.f32.mrb[17].mxu1 }
0x108b   :  { %1178 = vperm.xlu0 %1442, %v1110_v52   ;;  %v1112_v53 = vpop.f32.mrb[18].mxu1 }
0x108c   :  { %v1221_v54 = vpack.c.bf16 %v1112_v53, %v1108_v51  ;;  %v1114_v55 = vpop.f32.mrb[19].mxu1 }
0x108d   :  { %1183 = vperm.xlu1 %1443, %v1114_v55  }
0x108e   :  { %1408 = vmatpush3.bf16.msra.mxu1 %v1221_v54 }
0x1091   :  { %v1170_v56 = vpop.f32.mrb[20].mxu0 }
0x1092   :  { %v1405_v57 = vpop.f32.mrb[21].mxu0  ;;  %v1189_v59 = vrot.slane %v1170_v56, %v1699_v38 }
0x1093   :  { %v1173_v33 = vpop.f32.mrb[22].mxu0 }
0x1094   :  { %v1406_v58 = vpop.f32.mrb[23].mxu0 }
0x110a   :  { %v1179_v60 = vpop.permute.xlu0 %1178 }
0x110b   :  { %v1190_v61 = vadd.f32 %v1189_v59, %v1179_v60 }
0x110c   :  { %v1184_v0 = vpop.permute.xlu1 %1183 }
0x110d   :  { %v1192_v62 = vmul.f32 0.2, %v1190_v61  ;;  %v1191_v63 = vadd.f32 %v1189_v59, %v1184_v0 }
0x110f   :  { %v1194_v1 = vmax.f32 %v1190_v61, %v1192_v62  ;;  %v1193_v2 = vmul.f32 0.2, %v1191_v63 }
0x1111   :  { %v1195_v3 = vmax.f32 %v1191_v63, %v1193_v2  ;;  %v1196_v4 = vadd.f32 %v1701_v42, %v1194_v1 }
0x1113   :  { %v1198_v5 = vsel %vm217_vm3, %v1196_v4, -inf  ;;  %v1197_v6 = vadd.f32 %v1703_v45, %v1195_v3 }
0x1114   :  { %1199 = vmax.xlane.f32.xlu1 %v1198_v5 }
0x1115   :  { %v1201_v8 = vsel %vm217_vm3, %v1197_v6, -inf }
0x1116   :  { %1202 = vmax.xlane.f32.xlu0 %v1201_v8 }
0x11a1   :  { %v1200_v7 = vpop.xlane.xlu1 %1199 }
0x11a2   :  { %v1204_v38 = vsub.f32 %v1196_v4, %v1200_v7 }
0x11a3   :  { %v1203_v9 = vpop.xlane.xlu0 %1202 }
0x11a4   :  { %v1206_v10 = vmul.f32 1.442695, %v1204_v38  ;;  %v1205_v11 = vsub.f32 %v1197_v6, %v1203_v9 }
0x11a6   :  { %1516 = vpow2.f32 %v1206_v10  ;;  %v1208_v14 = vmul.f32 1.442695, %v1205_v11 }
0x11a8   :  { %1518 = vpow2.f32 %v1208_v14 }
0x11b0   :  { %v1517_v17 = vpop.eup %1516 }
0x11b1   :  { %v1210_v18 = vsel %vm217_vm3, %v1517_v17, 0.0 }
0x11b2   :  { %v1519_v42 = vpop.eup %1518  ;;  %1211 = vadd.xlane.f32.xlu0 %v1210_v18 }
0x11b3   :  { %v1213_v19 = vsel %vm217_vm3, %v1519_v42, 0.0 }
0x11b4   :  { %1214 = vadd.xlane.f32.xlu1 %v1213_v19 }
0x123f   :  { %v1212_v45 = vpop.xlane.xlu0 %1211 }
0x1240   :  { %1520 = vrcp.f32 %v1212_v45 }
0x1241   :  { %v1215_v20 = vpop.xlane.xlu1 %1214 }
0x1242   :  { %1522 = vrcp.f32 %v1215_v20 }
0x124a   :  { %v1521_v21 = vpop.eup %1520 }
0x124b   :  { %v1218_v23 = vmul.f32 %v1521_v21, %v1517_v17 }
0x124c   :  { %v1523_v22 = vpop.eup %1522 }
0x124d   :  { %v1219_v24 = vmul.f32 %v1523_v22, %v1519_v42 }
0x124f   :  { %v1220_v25 = vpack.c.bf16 %v1219_v24, %v1218_v23 }
0x1251   :  { %1410 = vmatmul.mubr.msk.bf16.vlgmr.msra.gmra.mrb[20].mxu1 %vm217_vm3, %v1220_v25 }
0x1324   :  { %v1265_v28 = vpop.f32.mrb[20].mxu1 }
0x1325   :  { %v1266_v29 = vadd.f32 %v1304_v27, %v1265_v28  ;;  %v1411_v30 = vpop.f32.mrb[21].mxu1 }
0x1326   :  { %v1268_v31 = vpop.f32.mrb[22].mxu1 }
0x1327   :  { %1272 = vst [vmem:[%s1965_s21] sm:$0xff] %v1266_v29  ;;  %v1269_v32 = vadd.f32 %v1304_v27, %v1268_v31  ;;  %v1412_v34 = vpop.f32.mrb[23].mxu1 }
0x1329   :  { %1273 = vst [vmem:[%s1965_s21 + $0x8] sm:$0xff] %v1269_v32 }

</bundles_post_ra>
